<compile_context>
chip_gen: v6e
topology: v6e:2x2x1
jax: 0.10.0
libtpu: 0.0.40
codegen_flags: <defaults>
</compile_context>

<pallas_src>
import functools
import math

import jax
import jax.numpy as jnp
from jax.experimental import pallas as pl
from jax.experimental.pallas import tpu as pltpu


# --------------------------------------------------------------------------
# In-kernel math helpers
# --------------------------------------------------------------------------
def _layernorm(h, g, b, eps):
    mu = jnp.mean(h, axis=-1, keepdims=True)
    hc = h - mu
    var = jnp.mean(hc * hc, axis=-1, keepdims=True)
    return hc * jax.lax.rsqrt(var + eps) * g + b


def _erf(z):
    # Abramowitz & Stegun 7.1.26 rational approximation of erf (|err| <= 1.5e-7),
    # built from exp/mul/add + an EUP reciprocal so it lowers cleanly in Mosaic.
    a1, a2, a3, a4, a5 = (0.254829592, -0.284496736, 1.421413741,
                          -1.453152027, 1.061405429)
    pc = 0.3275911
    sgn = jnp.where(z >= 0.0, 1.0, -1.0)
    za = jnp.abs(z)
    t = pl.reciprocal(1.0 + pc * za, approx=True)     # EUP slot, not VALU divide
    poly = t * (a1 + t * (a2 + t * (a3 + t * (a4 + t * a5))))
    return sgn * (1.0 - poly * jnp.exp(-za * za))


def _gelu(x):
    # exact (erf-based) GELU semantics, matching F.gelu(approximate='none')
    return 0.5 * x * (1.0 + _erf(x * (1.0 / math.sqrt(2.0))))


# --------------------------------------------------------------------------
# Fused encoder-stack kernel: one grid step == one transformer layer;
# the last grid step also applies the final LN + CLS pooling + projection.
# --------------------------------------------------------------------------
def _encoder_stack_kernel(
    x_hbm_ref,                     # (N, D)  f32 embeddings, memory_space=ANY
    in_w_ref,                      # (1, D, 3D)   bf16
    out_w_ref,                     # (1, D, D)    bf16
    ff1_w_ref,                     # (1, D, Hid)  bf16
    ff2_w_ref,                     # (1, Hid, D)  bf16
    vecs_ref,                      # (1, 8, WP)   f32  packed per-layer vectors
    lnf_g_ref, lnf_b_ref,          # (1, D)  f32
    proj_w_ref,                    # (D, OUT) f32
    proj_b_ref,                    # (1, OUT) f32
    out_ref,                       # (B, OUT) f32  written on the last grid step
    act_ref,                       # VMEM scratch (N, D) f32: resident activation
    load_sem,                      # DMA semaphore for the l==0 embedding load
    *, B, S, D, H, HID, eps,
):
    l = pl.program_id(0)
    n_layers = pl.num_programs(0)
    N = B * S
    dh = D // H
    scale = 1.0 / math.sqrt(dh)

    # Load the embeddings into the resident activation buffer once (manual DMA
    # from an ANY-space ref, so no (N, D) input block stays pinned in VMEM for
    # the whole kernel lifetime).
    @pl.when(l == 0)
    def _():
        cp = pltpu.make_async_copy(x_hbm_ref, act_ref, load_sem)
        cp.start()
        cp.wait()

    x = act_ref[...]                                            # (N, D) f32

    # Unpack the coalesced per-layer small vectors (one DMA per step).
    sv = vecs_ref[0]                                            # (8, WP) f32
    in_b = sv[0:1, :3 * D]
    out_b = sv[1:2, :D]
    ln1_g = sv[2:3, :D]
    ln1_b = sv[3:4, :D]
    ff1_b = sv[4:5, :HID]
    ff2_b = sv[5:6, :D]
    ln2_g = sv[6:7, :D]
    ln2_b = sv[7:8, :D]

    # ---- self-attention ----------------------------------------------------
    # bf16 weights x bf16 activations on the MXU, f32 accumulation.
    qkv = jnp.dot(x.astype(jnp.bfloat16), in_w_ref[0],
                  preferred_element_type=jnp.float32) + in_b    # (N, 3D)
    # NOTE: for real CLIP (D=512) offsets 0/D/2D are 128-lane aligned -> free
    # views; at the tiny demo shapes they are masked sub-tile slices.
    q = qkv[:, :D] * scale         # fold 1/sqrt(dh) into q
    k = qkv[:, D:2 * D]
    v = qkv[:, 2 * D:]
    q3 = q.reshape(B, S, D)
    k3 = k.reshape(B, S, D)
    v3 = v.reshape(B, S, D)

    # TODO(synk): the fully head-batched 'bqhc,bkhc->bhqk' formulation from the
    # perf review needs a 4-D dot_general with two batch dims (or an in-kernel
    # head-major transpose), neither of which has a documented Mosaic lowering;
    # we keep a static per-head loop of B-batched 3-D einsums but (a) removed
    # the per-head (N,D) accumulator RMW and (b) recombine all heads with ONE
    # contraction-D out-projection matmul below.
    head_outs = []
    for h in range(H):
        lo = h * dh
        qh = q3[:, :, lo:lo + dh]                               # (B, S, dh)
        kh = k3[:, :, lo:lo + dh]
        vh = v3[:, :, lo:lo + dh]
        s = jnp.einsum("bqc,bkc->bqk", qh, kh,
                       preferred_element_type=jnp.float32)      # (B, S, S)
        s = s - jnp.max(s, axis=-1, keepdims=True)
        p = jnp.exp(s)
        denom = jnp.sum(p, axis=-1, keepdims=True)
        # EUP approx reciprocal + one Newton step: off the divide unit but
        # numerically ~exact (review's softmax-drift concern).
        r = pl.reciprocal(denom, approx=True)
        r = r * (2.0 - denom * r)
        p = p * r
        head_outs.append(jnp.einsum("bqk,bkc->bqc", p, vh,
                                    preferred_element_type=jnp.float32))

    # Heads are contiguous on the feature axis -> one out-projection matmul
    # with contraction D (instead of H tiny-K matmuls + H accumulator passes).
    attn_cat = jnp.concatenate(head_outs, axis=-1).reshape(N, D)
    attn = jnp.dot(attn_cat.astype(jnp.bfloat16), out_w_ref[0],
                   preferred_element_type=jnp.float32) + out_b

    # ---- add & norm 1 (post-norm: nn.TransformerEncoderLayer default) ------
    x1 = _layernorm(x + attn, ln1_g, ln1_b, eps)

    # ---- feed-forward (exact erf-GELU) --------------------------------------
    # TODO(synk): for real CLIP shapes on v7x (64 MiB VMEM) chunk this FFN over
    # rows so the (chunk, Hid) intermediate stays small.
    hmid = jnp.dot(x1.astype(jnp.bfloat16), ff1_w_ref[0],
                   preferred_element_type=jnp.float32) + ff1_b
    hmid = _gelu(hmid)
    ff = jnp.dot(hmid.astype(jnp.bfloat16), ff2_w_ref[0],
                 preferred_element_type=jnp.float32) + ff2_b

    # ---- add & norm 2 --------------------------------------------------------
    x2 = _layernorm(x1 + ff, ln2_g, ln2_b, eps)
    act_ref[...] = x2

    # ---- last layer: final LN + x[:, 0] pooling + projection ----------------
    @pl.when(l == n_layers - 1)
    def _():
        # CLS pooling via static row slices (replaces the one-hot matmul+iotas).
        cls = jnp.concatenate([x2[b * S:b * S + 1, :] for b in range(B)], axis=0)
        cls = _layernorm(cls, lnf_g_ref[...], lnf_b_ref[...], eps)
        out_ref[...] = (
            jnp.dot(cls, proj_w_ref[...], preferred_element_type=jnp.float32)
            + proj_b_ref[...]
        )


# --------------------------------------------------------------------------
# Wrapper: embedding gather (XLA glue) + one fused pallas_call for the rest
# --------------------------------------------------------------------------
def text_encoder_forward(tokens, params, nheads=8):
    B, S = tokens.shape
    D = params["tok_emb"].shape[1]
    hidden = params["ff1_w"].shape[2]
    out_dim = params["proj_w"].shape[1]
    L = params["in_proj_w"].shape[0]
    N = B * S

    # token-embedding gather + positional embedding (kept in XLA: row gather)
    x = (params["tok_emb"][tokens] + params["pos_emb"][:S]).reshape(N, D)
    x = x.astype(jnp.float32)

    # Coalesce the 9 tiny per-layer vectors into one (L, 8, WP) tensor so each
    # grid step issues a single small DMA instead of ~9 (perf review).
    WP = max(3 * D, hidden, D)

    def _pad(v):
        return jnp.pad(v, ((0, 0), (0, WP - v.shape[1])))

    vecs = jnp.stack(
        [_pad(params["in_proj_b"]), _pad(params["out_proj_b"]),
         _pad(params["ln1_g"]), _pad(params["ln1_b"]),
         _pad(params["ff1_b"]), _pad(params["ff2_b"]),
         _pad(params["ln2_g"]), _pad(params["ln2_b"])],
        axis=1).astype(jnp.float32)                              # (L, 8, WP)

    kernel = functools.partial(
        _encoder_stack_kernel, B=B, S=S, D=D, H=nheads, HID=hidden, eps=1e-5)

    def layer_spec(*tail):   # stacked per-layer tensors, streamed by layer index
        return pl.BlockSpec((1,) + tail, lambda l: (l, 0, 0))

    def fixed_spec(*shape):  # layer-invariant tensors (block index constant -> DMA'd once)
        return pl.BlockSpec(shape, lambda l: (0, 0))

    grid_spec = pltpu.PrefetchScalarGridSpec(
        num_scalar_prefetch=0,
        grid=(L,),
        in_specs=[
            pl.BlockSpec(memory_space=pl.ANY),   # embeddings: manual DMA at l==0
            layer_spec(D, 3 * D),                # in_proj_w   (bf16)
            layer_spec(D, D),                    # out_proj_w  (bf16)
            layer_spec(D, hidden),               # ff1_w       (bf16)
            layer_spec(hidden, D),               # ff2_w       (bf16)
            layer_spec(8, WP),                   # packed per-layer vectors (f32)
            fixed_spec(1, D),                    # ln_final gamma
            fixed_spec(1, D),                    # ln_final beta
            fixed_spec(D, out_dim),              # projection weight
            fixed_spec(1, out_dim),              # projection bias
        ],
        out_specs=pl.BlockSpec((B, out_dim), lambda l: (0, 0)),
        scratch_shapes=[
            pltpu.VMEM((N, D), jnp.float32),     # resident activation
            pltpu.SemaphoreType.DMA(()),         # embedding-load semaphore
        ],
    )

    # VMEM budget: derive from the chip (v5e/v6e: 128 MiB, v7x: 64 MiB) instead
    # of a hardcoded 32 MiB, leaving headroom for Mosaic internal scratch.
    try:
        vmem_cap = pltpu.get_tpu_info().vmem_capacity_bytes
    except Exception:
        vmem_cap = 64 * 1024 * 1024
    vmem_limit = int(min(int(vmem_cap * 0.75), 100 * 1024 * 1024))

    return pl.pallas_call(
        kernel,
        out_shape=jax.ShapeDtypeStruct((B, out_dim), jnp.float32),
        grid_spec=grid_spec,
        compiler_params=pltpu.CompilerParams(
            # the layer axis is sequential: activation carried in VMEM scratch
            dimension_semantics=("arbitrary",),
            vmem_limit_bytes=vmem_limit,
        ),
    )(
        x,
        params["in_proj_w"], params["out_proj_w"],
        params["ff1_w"], params["ff2_w"],
        vecs,
        params["lnf_g"], params["lnf_b"],
        params["proj_w"], params["proj_b"],
    )


# --------------------------------------------------------------------------
# Pure-JAX (XLA) reference of the same module, used for a sanity check
# --------------------------------------------------------------------------
def _reference_forward(tokens, params, nheads):
    B, S = tokens.shape
    D = params["tok_emb"].shape[1]
    dh = D // nheads
    eps = 1e-5

    def ln(h, g, b):
        mu = jnp.mean(h, axis=-1, keepdims=True)
        var = jnp.mean((h - mu) ** 2, axis=-1, keepdims=True)
        return (h - mu) * jax.lax.rsqrt(var + eps) * g + b

    x = params["tok_emb"][tokens] + params["pos_emb"][:S]       # (B, S, D)
    xf = x.reshape(B * S, D).astype(jnp.float32)
    for l in range(params["in_proj_w"].shape[0]):
        qkv = xf @ params["in_proj_w"][l].astype(jnp.float32) + params["in_proj_b"][l]
        q, k, v = jnp.split(qkv, 3, axis=-1)

        def heads(t):
            return t.reshape(B, S, nheads, dh).transpose(0, 2, 1, 3)

        s = jnp.einsum("bhqd,bhkd->bhqk", heads(q), heads(k)) / math.sqrt(dh)
        p = jax.nn.softmax(s, axis=-1)
        o = jnp.einsum("bhqk,bhkd->bhqd", p, heads(v))
        o = o.transpose(0, 2, 1, 3).reshape(B * S, D)
        attn = o @ params["out_proj_w"][l].astype(jnp.float32) + params["out_proj_b"][l]
        x1 = ln(xf + attn, params["ln1_g"][l], params["ln1_b"][l])
        h = x1 @ params["ff1_w"][l].astype(jnp.float32) + params["ff1_b"][l]
        h = 0.5 * h * (1.0 + jax.lax.erf(h / math.sqrt(2.0)))   # exact GELU
        ff = h @ params["ff2_w"][l].astype(jnp.float32) + params["ff2_b"][l]
        xf = ln(x1 + ff, params["ln2_g"][l], params["ln2_b"][l])
    xf = ln(xf, params["lnf_g"], params["lnf_b"])
    cls = xf.reshape(B, S, D)[:, 0]
    return cls @ params["proj_w"] + params["proj_b"]


# --------------------------------------------------------------------------
# Deterministic synthetic parameter init (weights stacked along a layer axis)
# --------------------------------------------------------------------------
def init_params(key, vocab, d, hidden, out_dim, maxlen, nlayers):
    keys = jax.random.split(key, 6 + 12 * nlayers)

    def nrm(k, shape, scale=0.02):
        return scale * jax.random.normal(k, shape, jnp.float32)

    in_w, in_b, out_w, out_b = [], [], [], []
    f1_w, f1_b, f2_w, f2_b = [], [], [], []
    ln1g, ln1b, ln2g, ln2b = [], [], [], []
    for i in range(nlayers):
        ks = keys[6 + 12 * i: 6 + 12 * (i + 1)]
        in_w.append(nrm(ks[0], (d, 3 * d)))
        in_b.append(nrm(ks[1], (3 * d,)))
        out_w.append(nrm(ks[2], (d, d)))
        out_b.append(nrm(ks[3], (d,)))
        f1_w.append(nrm(ks[4], (d, hidden)))
        f1_b.append(nrm(ks[5], (hidden,)))
        f2_w.append(nrm(ks[6], (hidden, d)))
        f2_b.append(nrm(ks[7], (d,)))
        ln1g.append(1.0 + nrm(ks[8], (d,), 0.05))
        ln1b.append(nrm(ks[9], (d,), 0.02))
        ln2g.append(1.0 + nrm(ks[10], (d,), 0.05))
        ln2b.append(nrm(ks[11], (d,), 0.02))

    return {
        "tok_emb": nrm(keys[0], (vocab, d)),
        "pos_emb": jnp.zeros((maxlen, d), jnp.float32),          # torch.zeros init
        # Large stacked weights live in bf16 in HBM (perf review): halves the
        # per-layer weight-streaming bytes; f32 accumulation in-kernel.
        "in_proj_w": jnp.stack(in_w).astype(jnp.bfloat16),       # (L, d, 3d)
        "out_proj_w": jnp.stack(out_w).astype(jnp.bfloat16),     # (L, d, d)
        "ff1_w": jnp.stack(f1_w).astype(jnp.bfloat16),           # (L, d, hidden)
        "ff2_w": jnp.stack(f2_w).astype(jnp.bfloat16),           # (L, hidden, d)
        "in_proj_b": jnp.stack(in_b),                            # (L, 3d)
        "out_proj_b": jnp.stack(out_b),                          # (L, d)
        "ff1_b": jnp.stack(f1_b),                                # (L, hidden)
        "ff2_b": jnp.stack(f2_b),                                # (L, d)
        "ln1_g": jnp.stack(ln1g), "ln1_b": jnp.stack(ln1b),      # (L, d)
        "ln2_g": jnp.stack(ln2g), "ln2_b": jnp.stack(ln2b),      # (L, d)
        "lnf_g": (1.0 + nrm(keys[1], (d,), 0.05)).reshape(1, d),
        "lnf_b": nrm(keys[2], (d,), 0.02).reshape(1, d),
        "proj_w": nrm(keys[3], (d, out_dim)),
        "proj_b": nrm(keys[4], (1, out_dim)),
    }


if __name__ == "__main__":
    # Small shapes consistent with the module (embedding_dim divisible by nhead=8)
    VOCAB, D, HID, OUT, MAXLEN = 64, 32, 32, 32, 16
    NLAYERS, NHEADS = 6, 8
    B, S = 2, 8

    key = jax.random.PRNGKey(0)
    kp, kt = jax.random.split(key)
    params = init_params(kp, VOCAB, D, HID, OUT, MAXLEN, NLAYERS)
    tokens = jax.random.randint(kt, (B, S), 0, VOCAB, dtype=jnp.int32)

    fwd = jax.jit(functools.partial(text_encoder_forward, nheads=NHEADS))
    out = fwd(tokens, params)
    jax.block_until_ready(out)
    assert out.shape == (B, OUT) and out.dtype == jnp.float32

    # sanity check against a pure-JAX reference of the same module
    ref = _reference_forward(tokens, params, NHEADS)
    err = float(jnp.max(jnp.abs(out - ref)))
    assert err < 2e-2, f"kernel/reference mismatch: max abs err = {err}"

    print("KERNEL_OK")
</pallas_src>

<mosaic_0001>
module attributes {stable_mosaic.version = 11 : i64} {
  func.func @_encoder_stack_kernel(%arg0: i32, %arg1: memref<16x32xf32, #tpu.memory_space<any>>, %arg2: memref<1x32x96xbf16, #tpu.memory_space<vmem>>, %arg3: memref<1x32x32xbf16, #tpu.memory_space<vmem>>, %arg4: memref<1x32x32xbf16, #tpu.memory_space<vmem>>, %arg5: memref<1x32x32xbf16, #tpu.memory_space<vmem>>, %arg6: memref<1x8x96xf32, #tpu.memory_space<vmem>>, %arg7: memref<1x32xf32, #tpu.memory_space<vmem>>, %arg8: memref<1x32xf32, #tpu.memory_space<vmem>>, %arg9: memref<32x32xf32, #tpu.memory_space<vmem>>, %arg10: memref<1x32xf32, #tpu.memory_space<vmem>>, %arg11: memref<2x32xf32, #tpu.memory_space<vmem>>, %arg12: memref<16x32xf32, #tpu.memory_space<vmem>>, %arg13: memref<!tpu.dma_semaphore, #tpu.memory_space<semaphore_mem>>) attributes {dimension_semantics = [#tpu.dimension_semantics<arbitrary>], iteration_bounds = array<i64: 6>, scalar_prefetch = 0 : i64, scratch_operands = 2 : i64, tpu.core_type = #tpu.core_type<tc>, window_params = [{}, {transform_indices = @transform_1, window_bounds = array<i64: 1, 32, 96>}, {transform_indices = @transform_2, window_bounds = array<i64: 1, 32, 32>}, {transform_indices = @transform_3, window_bounds = array<i64: 1, 32, 32>}, {transform_indices = @transform_4, window_bounds = array<i64: 1, 32, 32>}, {transform_indices = @transform_5, window_bounds = array<i64: 1, 8, 96>}, {pipeline_mode = #tpu.pipeline_mode<synchronous>, transform_indices = @transform_6, window_bounds = array<i64: 1, 32>}, {pipeline_mode = #tpu.pipeline_mode<synchronous>, transform_indices = @transform_7, window_bounds = array<i64: 1, 32>}, {pipeline_mode = #tpu.pipeline_mode<synchronous>, transform_indices = @transform_8, window_bounds = array<i64: 32, 32>}, {pipeline_mode = #tpu.pipeline_mode<synchronous>, transform_indices = @transform_9, window_bounds = array<i64: 1, 32>}, {pipeline_mode = #tpu.pipeline_mode<synchronous>, transform_indices = @transform_10, window_bounds = array<i64: 2, 32>}]} {
    %c0_i32 = arith.constant 0 : i32
    %0 = arith.cmpi eq, %arg0, %c0_i32 : i32
    %1 = arith.extui %0 : i1 to i32
    %c0_i32_0 = arith.constant 0 : i32
    %2 = arith.cmpi ne, %1, %c0_i32_0 : i32
    scf.if %2 {
      tpu.enqueue_dma source(%arg1 : memref<16x32xf32, #tpu.memory_space<any>>) target(%arg12 : memref<16x32xf32, #tpu.memory_space<vmem>>) target_semaphore(%arg13 : memref<!tpu.dma_semaphore, #tpu.memory_space<semaphore_mem>>)
      tpu.wait_dma2 semaphore(%arg13 : memref<!tpu.dma_semaphore, #tpu.memory_space<semaphore_mem>>) src(%arg1 : memref<16x32xf32, #tpu.memory_space<any>>) dst(%arg12 : memref<16x32xf32, #tpu.memory_space<vmem>>)
    } else {
    }
    %c0 = arith.constant 0 : index
    %c0_1 = arith.constant 0 : index
    %3 = vector.load %arg12[%c0, %c0_1] : memref<16x32xf32, #tpu.memory_space<vmem>>, vector<16x32xf32>
    %c0_2 = arith.constant 0 : index
    %c0_3 = arith.constant 0 : index
    %c0_4 = arith.constant 0 : index
    %4 = vector.load %arg6[%c0_2, %c0_3, %c0_4] : memref<1x8x96xf32, #tpu.memory_space<vmem>>, vector<1x8x96xf32>
    %5 = vector.shape_cast %4 : vector<1x8x96xf32> to vector<8x96xf32>
    %6 = vector.extract_strided_slice %5 {offsets = [0, 0], sizes = [1, 96], strides = [1, 1]} : vector<8x96xf32> to vector<1x96xf32>
    %7 = vector.extract_strided_slice %5 {offsets = [1, 0], sizes = [1, 32], strides = [1, 1]} : vector<8x96xf32> to vector<1x32xf32>
    %8 = vector.extract_strided_slice %5 {offsets = [2, 0], sizes = [1, 32], strides = [1, 1]} : vector<8x96xf32> to vector<1x32xf32>
    %9 = vector.extract_strided_slice %5 {offsets = [3, 0], sizes = [1, 32], strides = [1, 1]} : vector<8x96xf32> to vector<1x32xf32>
    %10 = vector.extract_strided_slice %5 {offsets = [4, 0], sizes = [1, 32], strides = [1, 1]} : vector<8x96xf32> to vector<1x32xf32>
    %11 = vector.extract_strided_slice %5 {offsets = [5, 0], sizes = [1, 32], strides = [1, 1]} : vector<8x96xf32> to vector<1x32xf32>
    %12 = vector.extract_strided_slice %5 {offsets = [6, 0], sizes = [1, 32], strides = [1, 1]} : vector<8x96xf32> to vector<1x32xf32>
    %13 = vector.extract_strided_slice %5 {offsets = [7, 0], sizes = [1, 32], strides = [1, 1]} : vector<8x96xf32> to vector<1x32xf32>
    %14 = arith.truncf %3 : vector<16x32xf32> to vector<16x32xbf16>
    %c0_5 = arith.constant 0 : index
    %c0_6 = arith.constant 0 : index
    %c0_7 = arith.constant 0 : index
    %15 = vector.load %arg2[%c0_5, %c0_6, %c0_7] : memref<1x32x96xbf16, #tpu.memory_space<vmem>>, vector<1x32x96xbf16>
    %16 = vector.shape_cast %15 : vector<1x32x96xbf16> to vector<32x96xbf16>
    %cst = arith.constant dense<0.000000e+00> : vector<16x96xf32>
    %17 = tpu.matmul %14, %16, %cst {dimension_numbers = #tpu.dot_dimension_numbers<[1], [0], [0], [1], [0, 0, 1, 1], [], []>} : vector<16x32xbf16>, vector<32x96xbf16>, vector<16x96xf32> -> vector<16x96xf32>
    %18 = vector.broadcast %6 : vector<1x96xf32> to vector<16x96xf32>
    %19 = arith.addf %17, %18 : vector<16x96xf32>
    %20 = vector.extract_strided_slice %19 {offsets = [0, 0], sizes = [16, 32], strides = [1, 1]} : vector<16x96xf32> to vector<16x32xf32>
    %cst_8 = arith.constant 5.000000e-01 : f32
    %21 = vector.broadcast %cst_8 : f32 to vector<16x32xf32>
    %22 = arith.mulf %20, %21 : vector<16x32xf32>
    %23 = vector.extract_strided_slice %19 {offsets = [0, 32], sizes = [16, 32], strides = [1, 1]} : vector<16x96xf32> to vector<16x32xf32>
    %24 = vector.extract_strided_slice %19 {offsets = [0, 64], sizes = [16, 32], strides = [1, 1]} : vector<16x96xf32> to vector<16x32xf32>
    %25 = vector.shape_cast %22 : vector<16x32xf32> to vector<2x8x32xf32>
    %26 = vector.shape_cast %23 : vector<16x32xf32> to vector<2x8x32xf32>
    %27 = vector.shape_cast %24 : vector<16x32xf32> to vector<2x8x32xf32>
    %28 = vector.extract_strided_slice %25 {offsets = [0, 0, 0], sizes = [2, 8, 4], strides = [1, 1, 1]} : vector<2x8x32xf32> to vector<2x8x4xf32>
    %29 = vector.extract_strided_slice %26 {offsets = [0, 0, 0], sizes = [2, 8, 4], strides = [1, 1, 1]} : vector<2x8x32xf32> to vector<2x8x4xf32>
    %30 = vector.extract_strided_slice %27 {offsets = [0, 0, 0], sizes = [2, 8, 4], strides = [1, 1, 1]} : vector<2x8x32xf32> to vector<2x8x4xf32>
    "tpu.trace_start"() <{level = 10 : i32, message = "bqc,bkc->bqk"}> : () -> ()
    %cst_9 = arith.constant dense<0.000000e+00> : vector<2x8x8xf32>
    %31 = tpu.matmul %28, %29, %cst_9 {dimension_numbers = #tpu.dot_dimension_numbers<[2], [2], [1], [1], [0, 0, 0, 1, 1, 1], [0], [0]>} : vector<2x8x4xf32>, vector<2x8x4xf32>, vector<2x8x8xf32> -> vector<2x8x8xf32>
    "tpu.trace_stop"() : () -> ()
    %cst_10 = arith.constant dense<0xFF800000> : vector<2x8xf32>
    %32 = vector.multi_reduction <maximumf>, %31, %cst_10 [2] : vector<2x8x8xf32> to vector<2x8xf32>
    %33 = vector.shape_cast %32 : vector<2x8xf32> to vector<2x8x1xf32>
    %34 = vector.broadcast %33 : vector<2x8x1xf32> to vector<2x8x8xf32>
    %35 = arith.subf %31, %34 : vector<2x8x8xf32>
    %36 = math.exp %35 : vector<2x8x8xf32>
    %cst_11 = arith.constant dense<0.000000e+00> : vector<2x8xf32>
    %37 = vector.multi_reduction <add>, %36, %cst_11 [2] : vector<2x8x8xf32> to vector<2x8xf32>
    %38 = vector.shape_cast %37 : vector<2x8xf32> to vector<2x8x1xf32>
    %39 = tpu.reciprocal %38 {approx = true} : vector<2x8x1xf32> -> vector<2x8x1xf32>
    %40 = arith.mulf %38, %39 : vector<2x8x1xf32>
    %cst_12 = arith.constant 2.000000e+00 : f32
    %41 = vector.broadcast %cst_12 : f32 to vector<2x8x1xf32>
    %42 = arith.subf %41, %40 : vector<2x8x1xf32>
    %43 = arith.mulf %39, %42 : vector<2x8x1xf32>
    %44 = vector.broadcast %43 : vector<2x8x1xf32> to vector<2x8x8xf32>
    %45 = arith.mulf %36, %44 : vector<2x8x8xf32>
    "tpu.trace_start"() <{level = 10 : i32, message = "bqk,bkc->bqc"}> : () -> ()
    %cst_13 = arith.constant dense<0.000000e+00> : vector<2x8x4xf32>
    %46 = tpu.matmul %45, %30, %cst_13 {dimension_numbers = #tpu.dot_dimension_numbers<[2], [1], [1], [2], [0, 0, 0, 1, 1, 2], [0], [0]>} : vector<2x8x8xf32>, vector<2x8x4xf32>, vector<2x8x4xf32> -> vector<2x8x4xf32>
    "tpu.trace_stop"() : () -> ()
    %47 = vector.extract_strided_slice %25 {offsets = [0, 0, 4], sizes = [2, 8, 4], strides = [1, 1, 1]} : vector<2x8x32xf32> to vector<2x8x4xf32>
    %48 = vector.extract_strided_slice %26 {offsets = [0, 0, 4], sizes = [2, 8, 4], strides = [1, 1, 1]} : vector<2x8x32xf32> to vector<2x8x4xf32>
    %49 = vector.extract_strided_slice %27 {offsets = [0, 0, 4], sizes = [2, 8, 4], strides = [1, 1, 1]} : vector<2x8x32xf32> to vector<2x8x4xf32>
    "tpu.trace_start"() <{level = 10 : i32, message = "bqc,bkc->bqk"}> : () -> ()
    %cst_14 = arith.constant dense<0.000000e+00> : vector<2x8x8xf32>
    %50 = tpu.matmul %47, %48, %cst_14 {dimension_numbers = #tpu.dot_dimension_numbers<[2], [2], [1], [1], [0, 0, 0, 1, 1, 1], [0], [0]>} : vector<2x8x4xf32>, vector<2x8x4xf32>, vector<2x8x8xf32> -> vector<2x8x8xf32>
    "tpu.trace_stop"() : () -> ()
    %cst_15 = arith.constant dense<0xFF800000> : vector<2x8xf32>
    %51 = vector.multi_reduction <maximumf>, %50, %cst_15 [2] : vector<2x8x8xf32> to vector<2x8xf32>
    %52 = vector.shape_cast %51 : vector<2x8xf32> to vector<2x8x1xf32>
    %53 = vector.broadcast %52 : vector<2x8x1xf32> to vector<2x8x8xf32>
    %54 = arith.subf %50, %53 : vector<2x8x8xf32>
    %55 = math.exp %54 : vector<2x8x8xf32>
    %cst_16 = arith.constant dense<0.000000e+00> : vector<2x8xf32>
    %56 = vector.multi_reduction <add>, %55, %cst_16 [2] : vector<2x8x8xf32> to vector<2x8xf32>
    %57 = vector.shape_cast %56 : vector<2x8xf32> to vector<2x8x1xf32>
    %58 = tpu.reciprocal %57 {approx = true} : vector<2x8x1xf32> -> vector<2x8x1xf32>
    %59 = arith.mulf %57, %58 : vector<2x8x1xf32>
    %cst_17 = arith.constant 2.000000e+00 : f32
    %60 = vector.broadcast %cst_17 : f32 to vector<2x8x1xf32>
    %61 = arith.subf %60, %59 : vector<2x8x1xf32>
    %62 = arith.mulf %58, %61 : vector<2x8x1xf32>
    %63 = vector.broadcast %62 : vector<2x8x1xf32> to vector<2x8x8xf32>
    %64 = arith.mulf %55, %63 : vector<2x8x8xf32>
    "tpu.trace_start"() <{level = 10 : i32, message = "bqk,bkc->bqc"}> : () -> ()
    %cst_18 = arith.constant dense<0.000000e+00> : vector<2x8x4xf32>
    %65 = tpu.matmul %64, %49, %cst_18 {dimension_numbers = #tpu.dot_dimension_numbers<[2], [1], [1], [2], [0, 0, 0, 1, 1, 2], [0], [0]>} : vector<2x8x8xf32>, vector<2x8x4xf32>, vector<2x8x4xf32> -> vector<2x8x4xf32>
    "tpu.trace_stop"() : () -> ()
    %66 = vector.extract_strided_slice %25 {offsets = [0, 0, 8], sizes = [2, 8, 4], strides = [1, 1, 1]} : vector<2x8x32xf32> to vector<2x8x4xf32>
    %67 = vector.extract_strided_slice %26 {offsets = [0, 0, 8], sizes = [2, 8, 4], strides = [1, 1, 1]} : vector<2x8x32xf32> to vector<2x8x4xf32>
    %68 = vector.extract_strided_slice %27 {offsets = [0, 0, 8], sizes = [2, 8, 4], strides = [1, 1, 1]} : vector<2x8x32xf32> to vector<2x8x4xf32>
    "tpu.trace_start"() <{level = 10 : i32, message = "bqc,bkc->bqk"}> : () -> ()
    %cst_19 = arith.constant dense<0.000000e+00> : vector<2x8x8xf32>
    %69 = tpu.matmul %66, %67, %cst_19 {dimension_numbers = #tpu.dot_dimension_numbers<[2], [2], [1], [1], [0, 0, 0, 1, 1, 1], [0], [0]>} : vector<2x8x4xf32>, vector<2x8x4xf32>, vector<2x8x8xf32> -> vector<2x8x8xf32>
    "tpu.trace_stop"() : () -> ()
    %cst_20 = arith.constant dense<0xFF800000> : vector<2x8xf32>
    %70 = vector.multi_reduction <maximumf>, %69, %cst_20 [2] : vector<2x8x8xf32> to vector<2x8xf32>
    %71 = vector.shape_cast %70 : vector<2x8xf32> to vector<2x8x1xf32>
    %72 = vector.broadcast %71 : vector<2x8x1xf32> to vector<2x8x8xf32>
    %73 = arith.subf %69, %72 : vector<2x8x8xf32>
    %74 = math.exp %73 : vector<2x8x8xf32>
    %cst_21 = arith.constant dense<0.000000e+00> : vector<2x8xf32>
    %75 = vector.multi_reduction <add>, %74, %cst_21 [2] : vector<2x8x8xf32> to vector<2x8xf32>
    %76 = vector.shape_cast %75 : vector<2x8xf32> to vector<2x8x1xf32>
    %77 = tpu.reciprocal %76 {approx = true} : vector<2x8x1xf32> -> vector<2x8x1xf32>
    %78 = arith.mulf %76, %77 : vector<2x8x1xf32>
    %cst_22 = arith.constant 2.000000e+00 : f32
    %79 = vector.broadcast %cst_22 : f32 to vector<2x8x1xf32>
    %80 = arith.subf %79, %78 : vector<2x8x1xf32>
    %81 = arith.mulf %77, %80 : vector<2x8x1xf32>
    %82 = vector.broadcast %81 : vector<2x8x1xf32> to vector<2x8x8xf32>
    %83 = arith.mulf %74, %82 : vector<2x8x8xf32>
    "tpu.trace_start"() <{level = 10 : i32, message = "bqk,bkc->bqc"}> : () -> ()
    %cst_23 = arith.constant dense<0.000000e+00> : vector<2x8x4xf32>
    %84 = tpu.matmul %83, %68, %cst_23 {dimension_numbers = #tpu.dot_dimension_numbers<[2], [1], [1], [2], [0, 0, 0, 1, 1, 2], [0], [0]>} : vector<2x8x8xf32>, vector<2x8x4xf32>, vector<2x8x4xf32> -> vector<2x8x4xf32>
    "tpu.trace_stop"() : () -> ()
    %85 = vector.extract_strided_slice %25 {offsets = [0, 0, 12], sizes = [2, 8, 4], strides = [1, 1, 1]} : vector<2x8x32xf32> to vector<2x8x4xf32>
    %86 = vector.extract_strided_slice %26 {offsets = [0, 0, 12], sizes = [2, 8, 4], strides = [1, 1, 1]} : vector<2x8x32xf32> to vector<2x8x4xf32>
    %87 = vector.extract_strided_slice %27 {offsets = [0, 0, 12], sizes = [2, 8, 4], strides = [1, 1, 1]} : vector<2x8x32xf32> to vector<2x8x4xf32>
    "tpu.trace_start"() <{level = 10 : i32, message = "bqc,bkc->bqk"}> : () -> ()
    %cst_24 = arith.constant dense<0.000000e+00> : vector<2x8x8xf32>
    %88 = tpu.matmul %85, %86, %cst_24 {dimension_numbers = #tpu.dot_dimension_numbers<[2], [2], [1], [1], [0, 0, 0, 1, 1, 1], [0], [0]>} : vector<2x8x4xf32>, vector<2x8x4xf32>, vector<2x8x8xf32> -> vector<2x8x8xf32>
    "tpu.trace_stop"() : () -> ()
    %cst_25 = arith.constant dense<0xFF800000> : vector<2x8xf32>
    %89 = vector.multi_reduction <maximumf>, %88, %cst_25 [2] : vector<2x8x8xf32> to vector<2x8xf32>
    %90 = vector.shape_cast %89 : vector<2x8xf32> to vector<2x8x1xf32>
    %91 = vector.broadcast %90 : vector<2x8x1xf32> to vector<2x8x8xf32>
    %92 = arith.subf %88, %91 : vector<2x8x8xf32>
    %93 = math.exp %92 : vector<2x8x8xf32>
    %cst_26 = arith.constant dense<0.000000e+00> : vector<2x8xf32>
    %94 = vector.multi_reduction <add>, %93, %cst_26 [2] : vector<2x8x8xf32> to vector<2x8xf32>
    %95 = vector.shape_cast %94 : vector<2x8xf32> to vector<2x8x1xf32>
    %96 = tpu.reciprocal %95 {approx = true} : vector<2x8x1xf32> -> vector<2x8x1xf32>
    %97 = arith.mulf %95, %96 : vector<2x8x1xf32>
    %cst_27 = arith.constant 2.000000e+00 : f32
    %98 = vector.broadcast %cst_27 : f32 to vector<2x8x1xf32>
    %99 = arith.subf %98, %97 : vector<2x8x1xf32>
    %100 = arith.mulf %96, %99 : vector<2x8x1xf32>
    %101 = vector.broadcast %100 : vector<2x8x1xf32> to vector<2x8x8xf32>
    %102 = arith.mulf %93, %101 : vector<2x8x8xf32>
    "tpu.trace_start"() <{level = 10 : i32, message = "bqk,bkc->bqc"}> : () -> ()
    %cst_28 = arith.constant dense<0.000000e+00> : vector<2x8x4xf32>
    %103 = tpu.matmul %102, %87, %cst_28 {dimension_numbers = #tpu.dot_dimension_numbers<[2], [1], [1], [2], [0, 0, 0, 1, 1, 2], [0], [0]>} : vector<2x8x8xf32>, vector<2x8x4xf32>, vector<2x8x4xf32> -> vector<2x8x4xf32>
    "tpu.trace_stop"() : () -> ()
    %104 = vector.extract_strided_slice %25 {offsets = [0, 0, 16], sizes = [2, 8, 4], strides = [1, 1, 1]} : vector<2x8x32xf32> to vector<2x8x4xf32>
    %105 = vector.extract_strided_slice %26 {offsets = [0, 0, 16], sizes = [2, 8, 4], strides = [1, 1, 1]} : vector<2x8x32xf32> to vector<2x8x4xf32>
    %106 = vector.extract_strided_slice %27 {offsets = [0, 0, 16], sizes = [2, 8, 4], strides = [1, 1, 1]} : vector<2x8x32xf32> to vector<2x8x4xf32>
    "tpu.trace_start"() <{level = 10 : i32, message = "bqc,bkc->bqk"}> : () -> ()
    %cst_29 = arith.constant dense<0.000000e+00> : vector<2x8x8xf32>
    %107 = tpu.matmul %104, %105, %cst_29 {dimension_numbers = #tpu.dot_dimension_numbers<[2], [2], [1], [1], [0, 0, 0, 1, 1, 1], [0], [0]>} : vector<2x8x4xf32>, vector<2x8x4xf32>, vector<2x8x8xf32> -> vector<2x8x8xf32>
    "tpu.trace_stop"() : () -> ()
    %cst_30 = arith.constant dense<0xFF800000> : vector<2x8xf32>
    %108 = vector.multi_reduction <maximumf>, %107, %cst_30 [2] : vector<2x8x8xf32> to vector<2x8xf32>
    %109 = vector.shape_cast %108 : vector<2x8xf32> to vector<2x8x1xf32>
    %110 = vector.broadcast %109 : vector<2x8x1xf32> to vector<2x8x8xf32>
    %111 = arith.subf %107, %110 : vector<2x8x8xf32>
    %112 = math.exp %111 : vector<2x8x8xf32>
    %cst_31 = arith.constant dense<0.000000e+00> : vector<2x8xf32>
    %113 = vector.multi_reduction <add>, %112, %cst_31 [2] : vector<2x8x8xf32> to vector<2x8xf32>
    %114 = vector.shape_cast %113 : vector<2x8xf32> to vector<2x8x1xf32>
    %115 = tpu.reciprocal %114 {approx = true} : vector<2x8x1xf32> -> vector<2x8x1xf32>
    %116 = arith.mulf %114, %115 : vector<2x8x1xf32>
    %cst_32 = arith.constant 2.000000e+00 : f32
    %117 = vector.broadcast %cst_32 : f32 to vector<2x8x1xf32>
    %118 = arith.subf %117, %116 : vector<2x8x1xf32>
    %119 = arith.mulf %115, %118 : vector<2x8x1xf32>
    %120 = vector.broadcast %119 : vector<2x8x1xf32> to vector<2x8x8xf32>
    %121 = arith.mulf %112, %120 : vector<2x8x8xf32>
    "tpu.trace_start"() <{level = 10 : i32, message = "bqk,bkc->bqc"}> : () -> ()
    %cst_33 = arith.constant dense<0.000000e+00> : vector<2x8x4xf32>
    %122 = tpu.matmul %121, %106, %cst_33 {dimension_numbers = #tpu.dot_dimension_numbers<[2], [1], [1], [2], [0, 0, 0, 1, 1, 2], [0], [0]>} : vector<2x8x8xf32>, vector<2x8x4xf32>, vector<2x8x4xf32> -> vector<2x8x4xf32>
    "tpu.trace_stop"() : () -> ()
    %123 = vector.extract_strided_slice %25 {offsets = [0, 0, 20], sizes = [2, 8, 4], strides = [1, 1, 1]} : vector<2x8x32xf32> to vector<2x8x4xf32>
    %124 = vector.extract_strided_slice %26 {offsets = [0, 0, 20], sizes = [2, 8, 4], strides = [1, 1, 1]} : vector<2x8x32xf32> to vector<2x8x4xf32>
    %125 = vector.extract_strided_slice %27 {offsets = [0, 0, 20], sizes = [2, 8, 4], strides = [1, 1, 1]} : vector<2x8x32xf32> to vector<2x8x4xf32>
    "tpu.trace_start"() <{level = 10 : i32, message = "bqc,bkc->bqk"}> : () -> ()
    %cst_34 = arith.constant dense<0.000000e+00> : vector<2x8x8xf32>
    %126 = tpu.matmul %123, %124, %cst_34 {dimension_numbers = #tpu.dot_dimension_numbers<[2], [2], [1], [1], [0, 0, 0, 1, 1, 1], [0], [0]>} : vector<2x8x4xf32>, vector<2x8x4xf32>, vector<2x8x8xf32> -> vector<2x8x8xf32>
    "tpu.trace_stop"() : () -> ()
    %cst_35 = arith.constant dense<0xFF800000> : vector<2x8xf32>
    %127 = vector.multi_reduction <maximumf>, %126, %cst_35 [2] : vector<2x8x8xf32> to vector<2x8xf32>
    %128 = vector.shape_cast %127 : vector<2x8xf32> to vector<2x8x1xf32>
    %129 = vector.broadcast %128 : vector<2x8x1xf32> to vector<2x8x8xf32>
    %130 = arith.subf %126, %129 : vector<2x8x8xf32>
    %131 = math.exp %130 : vector<2x8x8xf32>
    %cst_36 = arith.constant dense<0.000000e+00> : vector<2x8xf32>
    %132 = vector.multi_reduction <add>, %131, %cst_36 [2] : vector<2x8x8xf32> to vector<2x8xf32>
    %133 = vector.shape_cast %132 : vector<2x8xf32> to vector<2x8x1xf32>
    %134 = tpu.reciprocal %133 {approx = true} : vector<2x8x1xf32> -> vector<2x8x1xf32>
    %135 = arith.mulf %133, %134 : vector<2x8x1xf32>
    %cst_37 = arith.constant 2.000000e+00 : f32
    %136 = vector.broadcast %cst_37 : f32 to vector<2x8x1xf32>
    %137 = arith.subf %136, %135 : vector<2x8x1xf32>
    %138 = arith.mulf %134, %137 : vector<2x8x1xf32>
    %139 = vector.broadcast %138 : vector<2x8x1xf32> to vector<2x8x8xf32>
    %140 = arith.mulf %131, %139 : vector<2x8x8xf32>
    "tpu.trace_start"() <{level = 10 : i32, message = "bqk,bkc->bqc"}> : () -> ()
    %cst_38 = arith.constant dense<0.000000e+00> : vector<2x8x4xf32>
    %141 = tpu.matmul %140, %125, %cst_38 {dimension_numbers = #tpu.dot_dimension_numbers<[2], [1], [1], [2], [0, 0, 0, 1, 1, 2], [0], [0]>} : vector<2x8x8xf32>, vector<2x8x4xf32>, vector<2x8x4xf32> -> vector<2x8x4xf32>
    "tpu.trace_stop"() : () -> ()
    %142 = vector.extract_strided_slice %25 {offsets = [0, 0, 24], sizes = [2, 8, 4], strides = [1, 1, 1]} : vector<2x8x32xf32> to vector<2x8x4xf32>
    %143 = vector.extract_strided_slice %26 {offsets = [0, 0, 24], sizes = [2, 8, 4], strides = [1, 1, 1]} : vector<2x8x32xf32> to vector<2x8x4xf32>
    %144 = vector.extract_strided_slice %27 {offsets = [0, 0, 24], sizes = [2, 8, 4], strides = [1, 1, 1]} : vector<2x8x32xf32> to vector<2x8x4xf32>
    "tpu.trace_start"() <{level = 10 : i32, message = "bqc,bkc->bqk"}> : () -> ()
    %cst_39 = arith.constant dense<0.000000e+00> : vector<2x8x8xf32>
    %145 = tpu.matmul %142, %143, %cst_39 {dimension_numbers = #tpu.dot_dimension_numbers<[2], [2], [1], [1], [0, 0, 0, 1, 1, 1], [0], [0]>} : vector<2x8x4xf32>, vector<2x8x4xf32>, vector<2x8x8xf32> -> vector<2x8x8xf32>
    "tpu.trace_stop"() : () -> ()
    %cst_40 = arith.constant dense<0xFF800000> : vector<2x8xf32>
    %146 = vector.multi_reduction <maximumf>, %145, %cst_40 [2] : vector<2x8x8xf32> to vector<2x8xf32>
    %147 = vector.shape_cast %146 : vector<2x8xf32> to vector<2x8x1xf32>
    %148 = vector.broadcast %147 : vector<2x8x1xf32> to vector<2x8x8xf32>
    %149 = arith.subf %145, %148 : vector<2x8x8xf32>
    %150 = math.exp %149 : vector<2x8x8xf32>
    %cst_41 = arith.constant dense<0.000000e+00> : vector<2x8xf32>
    %151 = vector.multi_reduction <add>, %150, %cst_41 [2] : vector<2x8x8xf32> to vector<2x8xf32>
    %152 = vector.shape_cast %151 : vector<2x8xf32> to vector<2x8x1xf32>
    %153 = tpu.reciprocal %152 {approx = true} : vector<2x8x1xf32> -> vector<2x8x1xf32>
    %154 = arith.mulf %152, %153 : vector<2x8x1xf32>
    %cst_42 = arith.constant 2.000000e+00 : f32
    %155 = vector.broadcast %cst_42 : f32 to vector<2x8x1xf32>
    %156 = arith.subf %155, %154 : vector<2x8x1xf32>
    %157 = arith.mulf %153, %156 : vector<2x8x1xf32>
    %158 = vector.broadcast %157 : vector<2x8x1xf32> to vector<2x8x8xf32>
    %159 = arith.mulf %150, %158 : vector<2x8x8xf32>
    "tpu.trace_start"() <{level = 10 : i32, message = "bqk,bkc->bqc"}> : () -> ()
    %cst_43 = arith.constant dense<0.000000e+00> : vector<2x8x4xf32>
    %160 = tpu.matmul %159, %144, %cst_43 {dimension_numbers = #tpu.dot_dimension_numbers<[2], [1], [1], [2], [0, 0, 0, 1, 1, 2], [0], [0]>} : vector<2x8x8xf32>, vector<2x8x4xf32>, vector<2x8x4xf32> -> vector<2x8x4xf32>
    "tpu.trace_stop"() : () -> ()
    %161 = vector.extract_strided_slice %25 {offsets = [0, 0, 28], sizes = [2, 8, 4], strides = [1, 1, 1]} : vector<2x8x32xf32> to vector<2x8x4xf32>
    %162 = vector.extract_strided_slice %26 {offsets = [0, 0, 28], sizes = [2, 8, 4], strides = [1, 1, 1]} : vector<2x8x32xf32> to vector<2x8x4xf32>
    %163 = vector.extract_strided_slice %27 {offsets = [0, 0, 28], sizes = [2, 8, 4], strides = [1, 1, 1]} : vector<2x8x32xf32> to vector<2x8x4xf32>
    "tpu.trace_start"() <{level = 10 : i32, message = "bqc,bkc->bqk"}> : () -> ()
    %cst_44 = arith.constant dense<0.000000e+00> : vector<2x8x8xf32>
    %164 = tpu.matmul %161, %162, %cst_44 {dimension_numbers = #tpu.dot_dimension_numbers<[2], [2], [1], [1], [0, 0, 0, 1, 1, 1], [0], [0]>} : vector<2x8x4xf32>, vector<2x8x4xf32>, vector<2x8x8xf32> -> vector<2x8x8xf32>
    "tpu.trace_stop"() : () -> ()
    %cst_45 = arith.constant dense<0xFF800000> : vector<2x8xf32>
    %165 = vector.multi_reduction <maximumf>, %164, %cst_45 [2] : vector<2x8x8xf32> to vector<2x8xf32>
    %166 = vector.shape_cast %165 : vector<2x8xf32> to vector<2x8x1xf32>
    %167 = vector.broadcast %166 : vector<2x8x1xf32> to vector<2x8x8xf32>
    %168 = arith.subf %164, %167 : vector<2x8x8xf32>
    %169 = math.exp %168 : vector<2x8x8xf32>
    %cst_46 = arith.constant dense<0.000000e+00> : vector<2x8xf32>
    %170 = vector.multi_reduction <add>, %169, %cst_46 [2] : vector<2x8x8xf32> to vector<2x8xf32>
    %171 = vector.shape_cast %170 : vector<2x8xf32> to vector<2x8x1xf32>
    %172 = tpu.reciprocal %171 {approx = true} : vector<2x8x1xf32> -> vector<2x8x1xf32>
    %173 = arith.mulf %171, %172 : vector<2x8x1xf32>
    %cst_47 = arith.constant 2.000000e+00 : f32
    %174 = vector.broadcast %cst_47 : f32 to vector<2x8x1xf32>
    %175 = arith.subf %174, %173 : vector<2x8x1xf32>
    %176 = arith.mulf %172, %175 : vector<2x8x1xf32>
    %177 = vector.broadcast %176 : vector<2x8x1xf32> to vector<2x8x8xf32>
    %178 = arith.mulf %169, %177 : vector<2x8x8xf32>
    "tpu.trace_start"() <{level = 10 : i32, message = "bqk,bkc->bqc"}> : () -> ()
    %cst_48 = arith.constant dense<0.000000e+00> : vector<2x8x4xf32>
    %179 = tpu.matmul %178, %163, %cst_48 {dimension_numbers = #tpu.dot_dimension_numbers<[2], [1], [1], [2], [0, 0, 0, 1, 1, 2], [0], [0]>} : vector<2x8x8xf32>, vector<2x8x4xf32>, vector<2x8x4xf32> -> vector<2x8x4xf32>
    "tpu.trace_stop"() : () -> ()
    %180 = tpu.concatenate %46, %65, %84, %103, %122, %141, %160, %179 in 2 : vector<2x8x4xf32>, vector<2x8x4xf32>, vector<2x8x4xf32>, vector<2x8x4xf32>, vector<2x8x4xf32>, vector<2x8x4xf32>, vector<2x8x4xf32>, vector<2x8x4xf32> -> vector<2x8x32xf32>
    %181 = vector.shape_cast %180 : vector<2x8x32xf32> to vector<16x32xf32>
    %182 = arith.truncf %181 : vector<16x32xf32> to vector<16x32xbf16>
    %c0_49 = arith.constant 0 : index
    %c0_50 = arith.constant 0 : index
    %c0_51 = arith.constant 0 : index
    %183 = vector.load %arg3[%c0_49, %c0_50, %c0_51] : memref<1x32x32xbf16, #tpu.memory_space<vmem>>, vector<1x32x32xbf16>
    %184 = vector.shape_cast %183 : vector<1x32x32xbf16> to vector<32x32xbf16>
    %cst_52 = arith.constant dense<0.000000e+00> : vector<16x32xf32>
    %185 = tpu.matmul %182, %184, %cst_52 {dimension_numbers = #tpu.dot_dimension_numbers<[1], [0], [0], [1], [0, 0, 1, 1], [], []>} : vector<16x32xbf16>, vector<32x32xbf16>, vector<16x32xf32> -> vector<16x32xf32>
    %186 = vector.broadcast %7 : vector<1x32xf32> to vector<16x32xf32>
    %187 = arith.addf %185, %186 : vector<16x32xf32>
    %188 = arith.addf %3, %187 : vector<16x32xf32>
    %cst_53 = arith.constant dense<0.000000e+00> : vector<16xf32>
    %189 = vector.multi_reduction <add>, %188, %cst_53 [1] : vector<16x32xf32> to vector<16xf32>
    %190 = vector.shape_cast %189 : vector<16xf32> to vector<16x1xf32>
    %cst_54 = arith.constant 3.200000e+01 : f32
    %191 = vector.broadcast %cst_54 : f32 to vector<16x1xf32>
    %192 = arith.divf %190, %191 : vector<16x1xf32>
    %193 = vector.broadcast %192 : vector<16x1xf32> to vector<16x32xf32>
    %194 = arith.subf %188, %193 : vector<16x32xf32>
    %195 = arith.mulf %194, %194 : vector<16x32xf32>
    %cst_55 = arith.constant dense<0.000000e+00> : vector<16xf32>
    %196 = vector.multi_reduction <add>, %195, %cst_55 [1] : vector<16x32xf32> to vector<16xf32>
    %197 = vector.shape_cast %196 : vector<16xf32> to vector<16x1xf32>
    %cst_56 = arith.constant 3.200000e+01 : f32
    %198 = vector.broadcast %cst_56 : f32 to vector<16x1xf32>
    %199 = arith.divf %197, %198 : vector<16x1xf32>
    %cst_57 = arith.constant 9.99999974E-6 : f32
    %200 = vector.broadcast %cst_57 : f32 to vector<16x1xf32>
    %201 = arith.addf %199, %200 : vector<16x1xf32>
    %202 = math.rsqrt %201 : vector<16x1xf32>
    %203 = vector.broadcast %202 : vector<16x1xf32> to vector<16x32xf32>
    %204 = arith.mulf %194, %203 : vector<16x32xf32>
    %205 = vector.broadcast %8 : vector<1x32xf32> to vector<16x32xf32>
    %206 = arith.mulf %204, %205 : vector<16x32xf32>
    %207 = vector.broadcast %9 : vector<1x32xf32> to vector<16x32xf32>
    %208 = arith.addf %206, %207 : vector<16x32xf32>
    %209 = arith.truncf %208 : vector<16x32xf32> to vector<16x32xbf16>
    %c0_58 = arith.constant 0 : index
    %c0_59 = arith.constant 0 : index
    %c0_60 = arith.constant 0 : index
    %210 = vector.load %arg4[%c0_58, %c0_59, %c0_60] : memref<1x32x32xbf16, #tpu.memory_space<vmem>>, vector<1x32x32xbf16>
    %211 = vector.shape_cast %210 : vector<1x32x32xbf16> to vector<32x32xbf16>
    %cst_61 = arith.constant dense<0.000000e+00> : vector<16x32xf32>
    %212 = tpu.matmul %209, %211, %cst_61 {dimension_numbers = #tpu.dot_dimension_numbers<[1], [0], [0], [1], [0, 0, 1, 1], [], []>} : vector<16x32xbf16>, vector<32x32xbf16>, vector<16x32xf32> -> vector<16x32xf32>
    %213 = vector.broadcast %10 : vector<1x32xf32> to vector<16x32xf32>
    %214 = arith.addf %212, %213 : vector<16x32xf32>
    %cst_62 = arith.constant 5.000000e-01 : f32
    %215 = vector.broadcast %cst_62 : f32 to vector<16x32xf32>
    %216 = arith.mulf %215, %214 : vector<16x32xf32>
    %cst_63 = arith.constant 0.707106769 : f32
    %217 = vector.broadcast %cst_63 : f32 to vector<16x32xf32>
    %218 = arith.mulf %214, %217 : vector<16x32xf32>
    %cst_64 = arith.constant 0.000000e+00 : f32
    %219 = vector.broadcast %cst_64 : f32 to vector<16x32xf32>
    %220 = arith.cmpf oge, %218, %219 : vector<16x32xf32>
    %cst_65 = arith.constant 1.000000e+00 : f32
    %cst_66 = arith.constant -1.000000e+00 : f32
    %221 = vector.broadcast %cst_65 : f32 to vector<16x32xf32>
    %222 = vector.broadcast %cst_66 : f32 to vector<16x32xf32>
    %223 = arith.select %220, %221, %222 : vector<16x32xi1>, vector<16x32xf32>
    %224 = math.absf %218 : vector<16x32xf32>
    %cst_67 = arith.constant 0.327591091 : f32
    %225 = vector.broadcast %cst_67 : f32 to vector<16x32xf32>
    %226 = arith.mulf %225, %224 : vector<16x32xf32>
    %cst_68 = arith.constant 1.000000e+00 : f32
    %227 = vector.broadcast %cst_68 : f32 to vector<16x32xf32>
    %228 = arith.addf %227, %226 : vector<16x32xf32>
    %229 = tpu.reciprocal %228 {approx = true} : vector<16x32xf32> -> vector<16x32xf32>
    %cst_69 = arith.constant 1.06140542 : f32
    %230 = vector.broadcast %cst_69 : f32 to vector<16x32xf32>
    %231 = arith.mulf %229, %230 : vector<16x32xf32>
    %cst_70 = arith.constant -1.45315206 : f32
    %232 = vector.broadcast %cst_70 : f32 to vector<16x32xf32>
    %233 = arith.addf %232, %231 : vector<16x32xf32>
    %234 = arith.mulf %229, %233 : vector<16x32xf32>
    %cst_71 = arith.constant 1.42141378 : f32
    %235 = vector.broadcast %cst_71 : f32 to vector<16x32xf32>
    %236 = arith.addf %235, %234 : vector<16x32xf32>
    %237 = arith.mulf %229, %236 : vector<16x32xf32>
    %cst_72 = arith.constant -0.284496725 : f32
    %238 = vector.broadcast %cst_72 : f32 to vector<16x32xf32>
    %239 = arith.addf %238, %237 : vector<16x32xf32>
    %240 = arith.mulf %229, %239 : vector<16x32xf32>
    %cst_73 = arith.constant 0.254829586 : f32
    %241 = vector.broadcast %cst_73 : f32 to vector<16x32xf32>
    %242 = arith.addf %241, %240 : vector<16x32xf32>
    %243 = arith.mulf %229, %242 : vector<16x32xf32>
    %cst_74 = arith.constant 0.000000e+00 : f32
    %244 = vector.broadcast %cst_74 : f32 to vector<16x32xf32>
    %245 = arith.subf %244, %224 : vector<16x32xf32>
    %246 = arith.mulf %245, %224 : vector<16x32xf32>
    %247 = math.exp %246 : vector<16x32xf32>
    %248 = arith.mulf %243, %247 : vector<16x32xf32>
    %cst_75 = arith.constant 1.000000e+00 : f32
    %249 = vector.broadcast %cst_75 : f32 to vector<16x32xf32>
    %250 = arith.subf %249, %248 : vector<16x32xf32>
    %251 = arith.mulf %223, %250 : vector<16x32xf32>
    %cst_76 = arith.constant 1.000000e+00 : f32
    %252 = vector.broadcast %cst_76 : f32 to vector<16x32xf32>
    %253 = arith.addf %252, %251 : vector<16x32xf32>
    %254 = arith.mulf %216, %253 : vector<16x32xf32>
    %255 = arith.truncf %254 : vector<16x32xf32> to vector<16x32xbf16>
    %c0_77 = arith.constant 0 : index
    %c0_78 = arith.constant 0 : index
    %c0_79 = arith.constant 0 : index
    %256 = vector.load %arg5[%c0_77, %c0_78, %c0_79] : memref<1x32x32xbf16, #tpu.memory_space<vmem>>, vector<1x32x32xbf16>
    %257 = vector.shape_cast %256 : vector<1x32x32xbf16> to vector<32x32xbf16>
    %cst_80 = arith.constant dense<0.000000e+00> : vector<16x32xf32>
    %258 = tpu.matmul %255, %257, %cst_80 {dimension_numbers = #tpu.dot_dimension_numbers<[1], [0], [0], [1], [0, 0, 1, 1], [], []>} : vector<16x32xbf16>, vector<32x32xbf16>, vector<16x32xf32> -> vector<16x32xf32>
    %259 = vector.broadcast %11 : vector<1x32xf32> to vector<16x32xf32>
    %260 = arith.addf %258, %259 : vector<16x32xf32>
    %261 = arith.addf %208, %260 : vector<16x32xf32>
    %cst_81 = arith.constant dense<0.000000e+00> : vector<16xf32>
    %262 = vector.multi_reduction <add>, %261, %cst_81 [1] : vector<16x32xf32> to vector<16xf32>
    %263 = vector.shape_cast %262 : vector<16xf32> to vector<16x1xf32>
    %cst_82 = arith.constant 3.200000e+01 : f32
    %264 = vector.broadcast %cst_82 : f32 to vector<16x1xf32>
    %265 = arith.divf %263, %264 : vector<16x1xf32>
    %266 = vector.broadcast %265 : vector<16x1xf32> to vector<16x32xf32>
    %267 = arith.subf %261, %266 : vector<16x32xf32>
    %268 = arith.mulf %267, %267 : vector<16x32xf32>
    %cst_83 = arith.constant dense<0.000000e+00> : vector<16xf32>
    %269 = vector.multi_reduction <add>, %268, %cst_83 [1] : vector<16x32xf32> to vector<16xf32>
    %270 = vector.shape_cast %269 : vector<16xf32> to vector<16x1xf32>
    %cst_84 = arith.constant 3.200000e+01 : f32
    %271 = vector.broadcast %cst_84 : f32 to vector<16x1xf32>
    %272 = arith.divf %270, %271 : vector<16x1xf32>
    %cst_85 = arith.constant 9.99999974E-6 : f32
    %273 = vector.broadcast %cst_85 : f32 to vector<16x1xf32>
    %274 = arith.addf %272, %273 : vector<16x1xf32>
    %275 = math.rsqrt %274 : vector<16x1xf32>
    %276 = vector.broadcast %275 : vector<16x1xf32> to vector<16x32xf32>
    %277 = arith.mulf %267, %276 : vector<16x32xf32>
    %278 = vector.broadcast %12 : vector<1x32xf32> to vector<16x32xf32>
    %279 = arith.mulf %277, %278 : vector<16x32xf32>
    %280 = vector.broadcast %13 : vector<1x32xf32> to vector<16x32xf32>
    %281 = arith.addf %279, %280 : vector<16x32xf32>
    %c0_86 = arith.constant 0 : index
    %c0_87 = arith.constant 0 : index
    %282 = vector.load %arg12[%c0_86, %c0_87] : memref<16x32xf32, #tpu.memory_space<vmem>>, vector<16x32xf32>
    tpu.vector_store %arg12[%c0_86, %c0_87], %281 {strides = array<i32>} : memref<16x32xf32, #tpu.memory_space<vmem>>, vector<16x32xf32>,
    %c5_i32 = arith.constant 5 : i32
    %283 = arith.cmpi eq, %arg0, %c5_i32 : i32
    %284 = arith.extui %283 : i1 to i32
    %c0_i32_88 = arith.constant 0 : i32
    %285 = arith.cmpi ne, %284, %c0_i32_88 : i32
    scf.if %285 {
      %286 = vector.extract_strided_slice %281 {offsets = [0, 0], sizes = [1, 32], strides = [1, 1]} : vector<16x32xf32> to vector<1x32xf32>
      %287 = vector.extract_strided_slice %281 {offsets = [8, 0], sizes = [1, 32], strides = [1, 1]} : vector<16x32xf32> to vector<1x32xf32>
      %288 = tpu.concatenate %286, %287 in 0 : vector<1x32xf32>, vector<1x32xf32> -> vector<2x32xf32>
      %c0_89 = arith.constant 0 : index
      %c0_90 = arith.constant 0 : index
      %289 = vector.load %arg7[%c0_89, %c0_90] : memref<1x32xf32, #tpu.memory_space<vmem>>, vector<1x32xf32>
      %c0_91 = arith.constant 0 : index
      %c0_92 = arith.constant 0 : index
      %290 = vector.load %arg8[%c0_91, %c0_92] : memref<1x32xf32, #tpu.memory_space<vmem>>, vector<1x32xf32>
      %cst_93 = arith.constant dense<0.000000e+00> : vector<2xf32>
      %291 = vector.multi_reduction <add>, %288, %cst_93 [1] : vector<2x32xf32> to vector<2xf32>
      %292 = vector.shape_cast %291 : vector<2xf32> to vector<2x1xf32>
      %cst_94 = arith.constant 3.200000e+01 : f32
      %293 = vector.broadcast %cst_94 : f32 to vector<2x1xf32>
      %294 = arith.divf %292, %293 : vector<2x1xf32>
      %295 = vector.broadcast %294 : vector<2x1xf32> to vector<2x32xf32>
      %296 = arith.subf %288, %295 : vector<2x32xf32>
      %297 = arith.mulf %296, %296 : vector<2x32xf32>
      %cst_95 = arith.constant dense<0.000000e+00> : vector<2xf32>
      %298 = vector.multi_reduction <add>, %297, %cst_95 [1] : vector<2x32xf32> to vector<2xf32>
      %299 = vector.shape_cast %298 : vector<2xf32> to vector<2x1xf32>
      %cst_96 = arith.constant 3.200000e+01 : f32
      %300 = vector.broadcast %cst_96 : f32 to vector<2x1xf32>
      %301 = arith.divf %299, %300 : vector<2x1xf32>
      %cst_97 = arith.constant 9.99999974E-6 : f32
      %302 = vector.broadcast %cst_97 : f32 to vector<2x1xf32>
      %303 = arith.addf %301, %302 : vector<2x1xf32>
      %304 = math.rsqrt %303 : vector<2x1xf32>
      %305 = vector.broadcast %304 : vector<2x1xf32> to vector<2x32xf32>
      %306 = arith.mulf %296, %305 : vector<2x32xf32>
      %307 = vector.broadcast %289 : vector<1x32xf32> to vector<2x32xf32>
      %308 = arith.mulf %306, %307 : vector<2x32xf32>
      %309 = vector.broadcast %290 : vector<1x32xf32> to vector<2x32xf32>
      %310 = arith.addf %308, %309 : vector<2x32xf32>
      %c0_98 = arith.constant 0 : index
      %c0_99 = arith.constant 0 : index
      %311 = vector.load %arg9[%c0_98, %c0_99] : memref<32x32xf32, #tpu.memory_space<vmem>>, vector<32x32xf32>
      %cst_100 = arith.constant dense<0.000000e+00> : vector<2x32xf32>
      %312 = tpu.matmul %310, %311, %cst_100 {dimension_numbers = #tpu.dot_dimension_numbers<[1], [0], [0], [1], [0, 0, 1, 1], [], []>} : vector<2x32xf32>, vector<32x32xf32>, vector<2x32xf32> -> vector<2x32xf32>
      %c0_101 = arith.constant 0 : index
      %c0_102 = arith.constant 0 : index
      %313 = vector.load %arg10[%c0_101, %c0_102] : memref<1x32xf32, #tpu.memory_space<vmem>>, vector<1x32xf32>
      %314 = vector.broadcast %313 : vector<1x32xf32> to vector<2x32xf32>
      %315 = arith.addf %312, %314 : vector<2x32xf32>
      %c0_103 = arith.constant 0 : index
      %c0_104 = arith.constant 0 : index
      %316 = vector.load %arg11[%c0_103, %c0_104] : memref<2x32xf32, #tpu.memory_space<vmem>>, vector<2x32xf32>
      tpu.vector_store %arg11[%c0_103, %c0_104], %315 {strides = array<i32>} : memref<2x32xf32, #tpu.memory_space<vmem>>, vector<2x32xf32>,
    } else {
    }
    return
  }
  func.func @transform_1(%arg0: i32) -> (i32, i32, i32) {
    %c0_i32 = arith.constant 0 : i32
    %c0_i32_0 = arith.constant 0 : i32
    %c0_i32_1 = arith.constant 0 : i32
    return %arg0, %c0_i32, %c0_i32_0 : i32, i32, i32
  }
  func.func @transform_2(%arg0: i32) -> (i32, i32, i32) {
    %c0_i32 = arith.constant 0 : i32
    %c0_i32_0 = arith.constant 0 : i32
    %c0_i32_1 = arith.constant 0 : i32
    return %arg0, %c0_i32, %c0_i32_0 : i32, i32, i32
  }
  func.func @transform_3(%arg0: i32) -> (i32, i32, i32) {
    %c0_i32 = arith.constant 0 : i32
    %c0_i32_0 = arith.constant 0 : i32
    %c0_i32_1 = arith.constant 0 : i32
    return %arg0, %c0_i32, %c0_i32_0 : i32, i32, i32
  }
  func.func @transform_4(%arg0: i32) -> (i32, i32, i32) {
    %c0_i32 = arith.constant 0 : i32
    %c0_i32_0 = arith.constant 0 : i32
    %c0_i32_1 = arith.constant 0 : i32
    return %arg0, %c0_i32, %c0_i32_0 : i32, i32, i32
  }
  func.func @transform_5(%arg0: i32) -> (i32, i32, i32) {
    %c0_i32 = arith.constant 0 : i32
    %c0_i32_0 = arith.constant 0 : i32
    %c0_i32_1 = arith.constant 0 : i32
    return %arg0, %c0_i32, %c0_i32_0 : i32, i32, i32
  }
  func.func @transform_6(%arg0: i32) -> (i32, i32) {
    %c0_i32 = arith.constant 0 : i32
    %c0_i32_0 = arith.constant 0 : i32
    %c0_i32_1 = arith.constant 0 : i32
    return %c0_i32, %c0_i32_0 : i32, i32
  }
  func.func @transform_7(%arg0: i32) -> (i32, i32) {
    %c0_i32 = arith.constant 0 : i32
    %c0_i32_0 = arith.constant 0 : i32
    %c0_i32_1 = arith.constant 0 : i32
    return %c0_i32, %c0_i32_0 : i32, i32
  }
  func.func @transform_8(%arg0: i32) -> (i32, i32) {
    %c0_i32 = arith.constant 0 : i32
    %c0_i32_0 = arith.constant 0 : i32
    %c0_i32_1 = arith.constant 0 : i32
    return %c0_i32, %c0_i32_0 : i32, i32
  }
  func.func @transform_9(%arg0: i32) -> (i32, i32) {
    %c0_i32 = arith.constant 0 : i32
    %c0_i32_0 = arith.constant 0 : i32
    %c0_i32_1 = arith.constant 0 : i32
    return %c0_i32, %c0_i32_0 : i32, i32
  }
  func.func @transform_10(%arg0: i32) -> (i32, i32) {
    %c0_i32 = arith.constant 0 : i32
    %c0_i32_0 = arith.constant 0 : i32
    %c0_i32_1 = arith.constant 0 : i32
    return %c0_i32, %c0_i32_0 : i32, i32
  }
}

</mosaic_0001>

<bundles_post_ra>
// kernel: text_encoder_forward.1
= control target key start
LH: loop header
LB: loop body
LE: loop exit
PB: predicated region body
PF: predicated region fallthrough
CT: control target
= control target key end

     0   :  { %15 = vsyncpa [#allocation5], 0  ;;  %s4527_s13 = smov 0   ;;  %s4964_s0 = inlined_call_operand.vmem [shape: f32[16,32], index: 0, kind: input, shape index: {}]   ;;  %s4965_s1 = inlined_call_operand.vmem [shape: bf16[6,32,96], index: 1, kind: input, shape index: {}]   ;;  %s4966_s2 = inlined_call_operand.vmem [shape: bf16[6,32,32], index: 2, kind: input, shape index: {}]   ;;  %s4967_s3 = inlined_call_operand.vmem [shape: bf16[6,32,32], index: 3, kind: input, shape index: {}]   ;;  %s4968_s4 = inlined_call_operand.vmem [shape: bf16[6,32,32], index: 4, kind: input, shape index: {}]   ;;  %s4969_s5 = inlined_call_operand.vmem [shape: f32[6,8,96], index: 5, kind: input, shape index: {}]   ;;  %s4970_s6 = inlined_call_operand.vmem [shape: f32[1,32], index: 6, kind: input, shape index: {}]   ;;  %s4971_s7 = inlined_call_operand.vmem [shape: f32[1,32], index: 7, kind: input, shape index: {}]   ;;  %s4972_s8 = inlined_call_operand.vmem [shape: f32[32,32], index: 8, kind: input, shape index: {}]   ;;  %s4973_s9 = inlined_call_operand.vmem [shape: f32[1,32], index: 9, kind: input, shape index: {}]   ;;  %s4974_s10 = inlined_call_operand.hbm [shape: f32[2,32], index: 10, kind: output, shape index: {}]  }
   0x1 LB: > { %s4533_s14 = sadd.s32 4294967295, %s4434_s13   ;;  %p3851_p0 = scmp.ge.s32.totalorder %s4434_s13, 1  ;;  %s4434_s13 = sphi %s4527_s13, %s21_s13  }
   0x2   : > { %p323_p1 = scmp.lt.s32.totalorder %s4434_s13, 7 }
   0x4   : > { %p324_p2 = pnand %p3851_p0, %p323_p1 }
   0x5   : > { %p373_p3 = scmp.lt.s32.totalorder (!%p324_p2), %s4533_s14, 5  ;;  %p3861_p4 = scmp.ne.s32.totalorder (!%p324_p2), %s4533_s14, 0 }
   0x6   : > { %327 = sbr.rel (%p324_p2) target bundleno = 6573 (0x19ad), region = 56 }
   0xb   : > { %s374_s15 = scalar_select %p373_p3, %s4533_s14, 5 }
   0xc   : > { %401 = sbr.rel (%p3861_p4) target bundleno = 22 (0x16), region = 60 }
   0xd   : > { %s3932_s16 = sshll.u32 %s374_s15, 4  ;;  %s3860_s17 = sshll.u32 %s374_s15, 3 }
   0xe   : > { %s377_s20 = scalar_lea.vmem %s4965_s1, %s3932_s16  ;;  %s4545_s23 = scalar_lea.vmem %s4966_s2, %s3932_s16 }
   0xf   : > { %s4550_s26 = scalar_lea.vmem %s4967_s3, %s3932_s16  ;;  %s4555_s29 = scalar_lea.vmem %s4968_s4, %s3932_s16 }
  0x10   : > { %s4560_s12 = scalar_lea.vmem %s4969_s5, %s3860_s17 }
  0x11   : > { %v435_v0 = vld [vmem:[%s4964_s0] sm:$0xff]  ;;  %v437_v1 = vld [vmem:[%s4964_s0 + $0x8] sm:$0xff] }
  0x12   : > { %436 = vst [vmem:[#allocation2] sm:$0xff] %v435_v0  ;;  %438 = vst [vmem:[#allocation2 + $0x8] sm:$0xff] %v437_v1 }
  0x13   : > { %446 = vsyncadd [#allocation3], 256 }
  0x14   : > { %4426 = dma.done.wait [#allocation3], 256 }
  0x15   : > { %4427 = vsyncadd [#allocation3], 4294967040 }
  0x16 PF: > { %v4305_v2 = vld [vmem:[%s377_s20 + $0x8] sm:$0xff]   ;;  %v4436_v3 = vmov 0.0   ;;  %v4306_v4 = vld [vmem:[%s377_s20] sm:$0xff]   ;;  %vm4437_vm0 = vmmov 0   ;;  %vm474_vm1 = vcmask 261120   ;;  %v458_v8 = vlaneseq  ;;  %s4438_s16 = smov 96  }
  0x17   : > { %4017 = vmatprep.subr.bf16.mxu0 %v4436_v3  ;;  %4025 = vmatprep.subr.mxu1 %v4436_v3  ;;  %v452_v11 = vld [vmem:[%s4560_s12] sm:$0xff]  ;;  %vm524_vm2 = vcmask 31744   ;;  %vm678_vm3 = vcmask 64512   ;;  %s4439_s17 = smov 64   ;;  %s4440_s20 = smov 92   ;;  %vm3271_vm4 = vcmask 97280  }
  0x18   : > { %4018 = vmatpush3.bf16.msra.mxu0 %v4305_v2  ;;  %4021 = vmatprep.mubr.msk.bf16.mxu0 %vm4437_vm0, %v4436_v3  ;;  %v4580_v9 = vshrl.u32 %v458_v8, 7  ;;  %s4441_s22 = smov 124   ;;  %s4442_s24 = smov 60   ;;  %vm3274_vm5 = vcmask 130048   ;;  %vm3277_vm6 = vcmask 162816   ;;  %vm3280_vm7 = vcmask 195584  }
  0x19   : > { %v450_v5 = vld [vmem:[#allocation2] sm:$0xff]  ;;  %v451_v6 = vld [vmem:[#allocation2 + $0x8] sm:$0xff]  ;;  %4019 = vmatprep.subr.bf16.mxu0 %v4436_v3  ;;  %4027 = vmatprep.mubr.msk.f32.mxu1 %vm4437_vm0, %v4436_v3  ;;  %s4443_s25 = smov 88   ;;  %s4444_s27 = smov 120   ;;  %vm3283_vm8 = vcmask 228352  }
  0x1a   : > { %v453_v7 = vpack.c.bf16 %v451_v6, %v450_v5  ;;  %v460_v10 = vsub.s32 0, %v4580_v9  ;;  %s4445_s28 = smov 56   ;;  %s4446_s30 = smov 84  }
  0x1b   : > { %s4447_s11 = smov 116   ;;  %s4448_s15 = smov 52  }
  0x1c   : > { %4020 = vmatpush3.bf16.msra.mxu0 %v4306_v4  ;;  %v461_v12 = vrot.slane %v452_v11, %v460_v10  ;;  %s4449_s18 = smov 80   ;;  %s4450_s19 = smov 112  }
  0x1d   : > { %4040 = vmatprep.subr.mxu0 %v4436_v3  ;;  %s4451_s21 = smov 48   ;;  %p3922_p5 = scmp.ne.s32.totalorder %s4533_s14, 5 }
  0x1f   : > { %4022 = vmatmul.mubr.msk.bf16.vlgmr.msra.gmra.mxu0 %vm474_vm1, %v453_v7 }
  0x20   : > { %4042 = vmatprep.mubr.msk.f32.mxu0 %vm4437_vm0, %v4436_v3 }
  0xdf   : > { %v512_v13 = vpop.f32.mrf.mxu0 }
  0xe0   : > { %v4584_v14 = vadd.f32 %v512_v13, %v461_v12 }
  0xe1   : > { %v4023_v15 = vpop.f32.mrf.mxu0 }
  0xe2   : > { %522 = vrot.lane.b32.xlu0 %v4584_v14, %s4438_s16  ;;  %v4592_v20 = vmul.f32 0.5, %v4584_v14 }
  0xe3   : > { %v515_v16 = vpop.f32.mrf.mxu0 }
  0xe4   : > { %v4587_v17 = vadd.f32 %v515_v16, %v461_v12 }
  0xe5   : > { %v4024_v18 = vpop.f32.mrf.mxu0 }
  0xe6   : > { %601 = vrot.lane.b32.xlu0 %v4587_v17, %s4438_s16  ;;  %v4601_v22 = vmul.f32 0.5, %v4587_v17  ;;  %s4452_s16 = smov 76  }
 0x154   : > { %v523_v19 = vpop.permute.xlu0 %522 }
 0x155   : > { %4026 = vmatpush3.xpose.msk.msra.mxu1 %vm524_vm2, %v523_v19 }
 0x156   : > { %4030 = vmatprep.subr.mxu1 %v4436_v3 }
 0x158   : > { %4028 = vmatmul.mubr.msk.f32.vlgmr.msra.gmra.mxu1 %vm524_vm2, %v4592_v20  ;;  %v602_v21 = vpop.permute.xlu0 %601 }
 0x159   : > { %4031 = vmatpush3.xpose.msk.msra.mxu1 %vm524_vm2, %v602_v21  ;;  %4032 = vmatprep.mubr.msk.f32.mxu1 %vm4437_vm0, %v4436_v3 }
 0x15a   : > { %4035 = vmatprep.subr.mxu1 %v4436_v3 }
 0x15c   : > { %4033 = vmatmul.mubr.msk.f32.vlgmr.msra.gmra.mxu1 %vm524_vm2, %v4601_v22 }
 0x15d   : > { %4037 = vmatprep.mubr.msk.f32.mxu1 %vm4437_vm0, %v4436_v3 }
 0x218   : > { %v596_v23 = vpop.f32.mrf.mxu1 }
 0x219   : > { %v679_v24 = vsel %vm678_vm3, %v596_v23, -inf }
 0x21a   : > { %680 = vmax.xlane.f32.xlu1 %v679_v24  ;;  %v4029_v25 = vpop.f32.mrf.mxu1 }
 0x21c   : > { %v674_v26 = vpop.f32.mrf.mxu1 }
 0x21d   : > { %v682_v27 = vsel %vm678_vm3, %v674_v26, -inf }
 0x21e   : > { %683 = vmax.xlane.f32.xlu1 %v682_v27  ;;  %v4034_v28 = vpop.f32.mrf.mxu1 }
 0x22f   : > { %707 = vrot.lane.b32.xlu1 %v4584_v14, %s4439_s17 }
 0x233   : > { %783 = vrot.lane.b32.xlu1 %v4587_v17, %s4439_s17  ;;  %s4453_s17 = smov 108  }
 0x237   : > { %861 = vrot.lane.b32.xlu1 %v4584_v14, %s4440_s20 }
 0x2a3   : > { %v681_v29 = vpop.xlane.xlu1 %680 }
 0x2a4   : > { %v685_v30 = vsub.f32 %v596_v23, %v681_v29 }
 0x2a6   : > { %v687_v31 = vmul.f32 1.442695, %v685_v30 }
 0x2a7   : > { %v684_v32 = vpop.xlane.xlu1 %683 }
 0x2a8   : > { %4313 = vpow2.f32 %v687_v31  ;;  %v686_v33 = vsub.f32 %v674_v26, %v684_v32 }
 0x2aa   : > { %v689_v34 = vmul.f32 1.442695, %v686_v33 }
 0x2ab   : > { %v708_v35 = vpop.permute.xlu1 %707 }
 0x2ac   : > { %4315 = vpow2.f32 %v689_v34  ;;  %4036 = vmatpush3.msra.mxu1 %v708_v35 }
 0x2ad   : > { %4045 = vmatprep.subr.mxu1 %v4436_v3 }
 0x2af   : > { %v784_v36 = vpop.permute.xlu1 %783 }
 0x2b0   : > { %4041 = vmatpush3.msra.mxu0 %v784_v36 }
 0x2b1   : > { %4050 = vmatprep.subr.mxu0 %v4436_v3 }
 0x2b3   : > { %v862_v41 = vpop.permute.xlu1 %861 }
 0x2b5   : > { %v4314_v37 = vpop.eup %4313 }
 0x2b6   : > { %v691_v38 = vsel %vm678_vm3, %v4314_v37, 0.0 }
 0x2b7   : > { %692 = vadd.xlane.f32.xlu0 %v691_v38 }
 0x2b9   : > { %v4316_v39 = vpop.eup %4315 }
 0x2ba   : > { %v694_v40 = vsel %vm678_vm3, %v4316_v39, 0.0 }
 0x2bb   : > { %695 = vadd.xlane.f32.xlu1 %v694_v40 }
 0x2cc   : > { %939 = vrot.lane.b32.xlu1 %v4587_v17, %s4440_s20  ;;  %s4454_s20 = smov 44  }
 0x2cd   : > { %859 = vrot.lane.b32.xlu0 %v4592_v20, %s4441_s22 }
 0x2d0   : > { %937 = vrot.lane.b32.xlu1 %v4601_v22, %s4441_s22  ;;  %s4455_s22 = smov 72  }
 0x340   : > { %v693_v42 = vpop.xlane.xlu0 %692 }
 0x341   : > { %4317 = vrcp.f32 %v693_v42 }
 0x344   : > { %v696_v43 = vpop.xlane.xlu1 %695  ;;  %v860_v55 = vpop.permute.xlu0 %859 }
 0x345   : > { %4319 = vrcp.f32 %v696_v43 }
 0x348   : > { %v940_v53 = vpop.permute.xlu1 %939 }
 0x34c   : > { %v938_v56 = vpop.permute.xlu1 %937 }
 0x34e   : > { %v4318_v44 = vpop.eup %4317 }
 0x34f   : > { %v699_v45 = vmul.f32 %v4318_v44, %v693_v42 }
 0x351   : > { %v701_v46 = vsub.f32 2.0, %v699_v45 }
 0x352   : > { %v4320_v47 = vpop.eup %4319 }
 0x353   : > { %v703_v48 = vmul.f32 %v4318_v44, %v701_v46  ;;  %v700_v49 = vmul.f32 %v4320_v47, %v696_v43 }
 0x355   : > { %v705_v50 = vmul.f32 %v4314_v37, %v703_v48  ;;  %v702_v51 = vsub.f32 2.0, %v700_v49 }
 0x357   : > { %v704_v52 = vmul.f32 %v4320_v47, %v702_v51  ;;  %4038 = vmatmul.mubr.msk.f32.vlgmr.msra.gmra.mxu1 %vm678_vm3, %v705_v50 }
 0x358   : > { %4046 = vmatpush3.xpose.msk.msra.mxu1 %vm524_vm2, %v862_v41  ;;  %4047 = vmatprep.mubr.msk.f32.mxu1 %vm4437_vm0, %v4436_v3 }
 0x359   : > { %v706_v54 = vmul.f32 %v4316_v39, %v704_v52  ;;  %4055 = vmatprep.subr.mxu1 %v4436_v3 }
 0x35b   : > { %4043 = vmatmul.mubr.msk.f32.vlgmr.msra.gmra.mxu0 %vm678_vm3, %v706_v54  ;;  %4048 = vmatmul.mubr.msk.f32.vlgmr.msra.gmra.mxu1 %vm524_vm2, %v860_v55 }
 0x35c   : > { %4051 = vmatpush3.xpose.msk.msra.mxu0 %vm524_vm2, %v940_v53  ;;  %4052 = vmatprep.mubr.msk.f32.mxu0 %vm4437_vm0, %v4436_v3 }
 0x35d   : > { %4060 = vmatprep.subr.mxu0 %v4436_v3  ;;  %4057 = vmatprep.mubr.msk.f32.mxu1 %vm4437_vm0, %v4436_v3 }
 0x35f   : > { %4053 = vmatmul.mubr.msk.f32.vlgmr.msra.gmra.mxu0 %vm524_vm2, %v938_v56 }
 0x360   : > { %4062 = vmatprep.mubr.msk.f32.mxu0 %vm4437_vm0, %v4436_v3 }
 0x417   : > { %v4636_v57 = vpop.f32.mrf.mxu1 }
 0x419   : > { %v4039_v58 = vpop.f32.mrf.mxu1 }
 0x41b   : > { %v4638_v59 = vpop.f32.mrf.mxu0  ;;  %v933_v60 = vpop.f32.mrf.mxu1 }
 0x41c   : > { %v1015_v61 = vsel %vm678_vm3, %v933_v60, -inf }
 0x41d   : > { %1016 = vmax.xlane.f32.xlu1 %v1015_v61  ;;  %v4044_v62 = vpop.f32.mrf.mxu0  ;;  %v4049_v63 = vpop.f32.mrf.mxu1 }
 0x41f   : > { %v1011_v0 = vpop.f32.mrf.mxu0 }
 0x420   : > { %v1018_v1 = vsel %vm678_vm3, %v1011_v0, -inf }
 0x421   : > { %1019 = vmax.xlane.f32.xlu0 %v1018_v1  ;;  %v4054_v2 = vpop.f32.mrf.mxu0 }
 0x42e   : > { %1043 = vrot.lane.b32.xlu1 %v4584_v14, %s4442_s24 }
 0x432   : > { %1197 = vrot.lane.b32.xlu1 %v4584_v14, %s4443_s25 }
 0x437   : > { %1119 = vrot.lane.b32.xlu0 %v4587_v17, %s4442_s24  ;;  %s4456_s24 = smov 104  }
 0x43b   : > { %1195 = vrot.lane.b32.xlu0 %v4592_v20, %s4444_s27 }
 0x4a6   : > { %v1017_v4 = vpop.xlane.xlu1 %1016 }
 0x4a7   : > { %v1021_v5 = vsub.f32 %v933_v60, %v1017_v4 }
 0x4a9   : > { %v1023_v6 = vmul.f32 1.442695, %v1021_v5 }
 0x4aa   : > { %v1044_v7 = vpop.permute.xlu1 %1043  ;;  %v1020_v8 = vpop.xlane.xlu0 %1019 }
 0x4ab   : > { %4321 = vpow2.f32 %v1023_v6  ;;  %v1022_v10 = vsub.f32 %v1011_v0, %v1020_v8  ;;  %4056 = vmatpush3.msra.mxu1 %v1044_v7 }
 0x4ac   : > { %4065 = vmatprep.subr.mxu1 %v4436_v3 }
 0x4ad   : > { %v1025_v11 = vmul.f32 1.442695, %v1022_v10 }
 0x4ae   : > { %v1120_v12 = vpop.permute.xlu0 %1119  ;;  %v1198_v19 = vpop.permute.xlu1 %1197 }
 0x4af   : > { %4323 = vpow2.f32 %v1025_v11  ;;  %4061 = vmatpush3.msra.mxu0 %v1120_v12 }
 0x4b0   : > { %4070 = vmatprep.subr.mxu0 %v4436_v3 }
 0x4b2   : > { %v1196_v35 = vpop.permute.xlu0 %1195 }
 0x4b8   : > { %v4322_v13 = vpop.eup %4321 }
 0x4b9   : > { %v1027_v15 = vsel %vm678_vm3, %v4322_v13, 0.0 }
 0x4ba   : > { %1028 = vadd.xlane.f32.xlu1 %v1027_v15 }
 0x4bc   : > { %v4324_v16 = vpop.eup %4323 }
 0x4bd   : > { %v1030_v18 = vsel %vm678_vm3, %v4324_v16, 0.0 }
 0x4be   : > { %1031 = vadd.xlane.f32.xlu1 %v1030_v18 }
 0x4cf   : > { %1275 = vrot.lane.b32.xlu1 %v4587_v17, %s4443_s25  ;;  %s4457_s25 = smov 40  }
 0x4d3   : > { %1273 = vrot.lane.b32.xlu1 %v4601_v22, %s4444_s27  ;;  %s4458_s27 = smov 68  }
 0x543   : > { %v1029_v21 = vpop.xlane.xlu1 %1028 }
 0x544   : > { %4325 = vrcp.f32 %v1029_v21 }
 0x547   : > { %v1032_v23 = vpop.xlane.xlu1 %1031 }
 0x548   : > { %4327 = vrcp.f32 %v1032_v23 }
 0x54b   : > { %v1276_v33 = vpop.permute.xlu1 %1275 }
 0x54f   : > { %v1274_v36 = vpop.permute.xlu1 %1273 }
 0x551   : > { %v4326_v24 = vpop.eup %4325 }
 0x552   : > { %v1035_v25 = vmul.f32 %v4326_v24, %v1029_v21 }
 0x554   : > { %v1037_v26 = vsub.f32 2.0, %v1035_v25 }
 0x555   : > { %v4328_v27 = vpop.eup %4327 }
 0x556   : > { %v1039_v28 = vmul.f32 %v4326_v24, %v1037_v26  ;;  %v1036_v29 = vmul.f32 %v4328_v27, %v1032_v23 }
 0x558   : > { %v1041_v30 = vmul.f32 %v4322_v13, %v1039_v28  ;;  %v1038_v31 = vsub.f32 2.0, %v1036_v29 }
 0x55a   : > { %v1040_v32 = vmul.f32 %v4328_v27, %v1038_v31  ;;  %4058 = vmatmul.mubr.msk.f32.vlgmr.msra.gmra.mxu1 %vm678_vm3, %v1041_v30 }
 0x55b   : > { %4066 = vmatpush3.xpose.msk.msra.mxu1 %vm524_vm2, %v1198_v19  ;;  %4067 = vmatprep.mubr.msk.f32.mxu1 %vm4437_vm0, %v4436_v3 }
 0x55c   : > { %v1042_v34 = vmul.f32 %v4324_v16, %v1040_v32  ;;  %4075 = vmatprep.subr.mxu1 %v4436_v3 }
 0x55e   : > { %4063 = vmatmul.mubr.msk.f32.vlgmr.msra.gmra.mxu0 %vm678_vm3, %v1042_v34  ;;  %4068 = vmatmul.mubr.msk.f32.vlgmr.msra.gmra.mxu1 %vm524_vm2, %v1196_v35 }
 0x55f   : > { %4071 = vmatpush3.xpose.msk.msra.mxu0 %vm524_vm2, %v1276_v33  ;;  %4072 = vmatprep.mubr.msk.f32.mxu0 %vm4437_vm0, %v4436_v3 }
 0x560   : > { %4080 = vmatprep.subr.mxu0 %v4436_v3  ;;  %4077 = vmatprep.mubr.msk.f32.mxu1 %vm4437_vm0, %v4436_v3 }
 0x562   : > { %4073 = vmatmul.mubr.msk.f32.vlgmr.msra.gmra.mxu0 %vm524_vm2, %v1274_v36 }
 0x563   : > { %4082 = vmatprep.mubr.msk.f32.mxu0 %vm4437_vm0, %v4436_v3 }
 0x61a   : > { %v4668_v37 = vpop.f32.mrf.mxu1 }
 0x61c   : > { %v4059_v38 = vpop.f32.mrf.mxu1 }
 0x61e   : > { %v4670_v39 = vpop.f32.mrf.mxu0  ;;  %v1269_v40 = vpop.f32.mrf.mxu1 }
 0x61f   : > { %v4270_v41 = vpack.i.bf16 %v4670_v39, %v4668_v37  ;;  %v1351_v42 = vsel %vm678_vm3, %v1269_v40, -inf }
 0x620   : > { %1352 = vmax.xlane.f32.xlu0 %v1351_v42  ;;  %v4064_v43 = vpop.f32.mrf.mxu0  ;;  %v4069_v44 = vpop.f32.mrf.mxu1 }
 0x622   : > { %v1347_v45 = vpop.f32.mrf.mxu0 }
 0x623   : > { %v1354_v46 = vsel %vm678_vm3, %v1347_v45, -inf }
 0x624   : > { %1355 = vmax.xlane.f32.xlu1 %v1354_v46  ;;  %v4074_v47 = vpop.f32.mrf.mxu0 }
 0x635   : > { %1379 = vrot.lane.b32.xlu1 %v4584_v14, %s4445_s28 }
 0x639   : > { %1533 = vrot.lane.b32.xlu1 %v4584_v14, %s4446_s30 }
 0x63d   : > { %1611 = vrot.lane.b32.xlu1 %v4587_v17, %s4446_s30  ;;  %s4460_s30 = smov 36  }
 0x641   : > { %1609 = vrot.lane.b32.xlu1 %v4601_v22, %s4447_s11 }
 0x6a9   : > { %v1353_v48 = vpop.xlane.xlu0 %1352 }
 0x6aa   : > { %v1357_v49 = vsub.f32 %v1269_v40, %v1353_v48 }
 0x6ac   : > { %v1359_v50 = vmul.f32 1.442695, %v1357_v49 }
 0x6ad   : > { %v1356_v51 = vpop.xlane.xlu1 %1355 }
 0x6ae   : > { %4329 = vpow2.f32 %v1359_v50  ;;  %v1358_v52 = vsub.f32 %v1347_v45, %v1356_v51 }
 0x6b0   : > { %v1361_v53 = vmul.f32 1.442695, %v1358_v52 }
 0x6b1   : > { %v1380_v54 = vpop.permute.xlu1 %1379 }
 0x6b2   : > { %4331 = vpow2.f32 %v1361_v53  ;;  %4076 = vmatpush3.msra.mxu1 %v1380_v54 }
 0x6b3   : > { %4085 = vmatprep.subr.mxu1 %v4436_v3 }
 0x6b5   : > { %v1534_v5 = vpop.permute.xlu1 %1533 }
 0x6b9   : > { %v1612_v12 = vpop.permute.xlu1 %1611 }
 0x6bb   : > { %v4330_v55 = vpop.eup %4329 }
 0x6bc   : > { %v1363_v56 = vsel %vm678_vm3, %v4330_v55, 0.0 }
 0x6bd   : > { %1364 = vadd.xlane.f32.xlu0 %v1363_v56  ;;  %v1610_v16 = vpop.permute.xlu1 %1609 }
 0x6bf   : > { %v4332_v58 = vpop.eup %4331 }
 0x6c0   : > { %v1366_v60 = vsel %vm678_vm3, %v4332_v58, 0.0 }
 0x6c1   : > { %1367 = vadd.xlane.f32.xlu0 %v1366_v60 }
 0x6d7   : > { %1455 = vrot.lane.b32.xlu0 %v4587_v17, %s4445_s28  ;;  %s4459_s28 = smov 100  }
 0x6db   : > { %1531 = vrot.lane.b32.xlu0 %v4592_v20, %s4447_s11  ;;  %s4461_s11 = smov 4  }
 0x746   : > { %v1365_v61 = vpop.xlane.xlu0 %1364 }
 0x747   : > { %4333 = vrcp.f32 %v1365_v61 }
 0x74a   : > { %v1368_v62 = vpop.xlane.xlu0 %1367 }
 0x74b   : > { %4335 = vrcp.f32 %v1368_v62 }
 0x74e   : > { %v1456_v63 = vpop.permute.xlu0 %1455 }
 0x74f   : > { %4081 = vmatpush3.msra.mxu0 %v1456_v63 }
 0x750   : > { %4090 = vmatprep.subr.mxu0 %v4436_v3 }
 0x752   : > { %v1532_v15 = vpop.permute.xlu0 %1531 }
 0x754   : > { %v4334_v0 = vpop.eup %4333 }
 0x755   : > { %v1371_v1 = vmul.f32 %v4334_v0, %v1365_v61 }
 0x757   : > { %v1373_v2 = vsub.f32 2.0, %v1371_v1 }
 0x758   : > { %v4336_v4 = vpop.eup %4335 }
 0x759   : > { %v1375_v6 = vmul.f32 %v4334_v0, %v1373_v2  ;;  %v1372_v7 = vmul.f32 %v4336_v4, %v1368_v62 }
 0x75b   : > { %v1377_v8 = vmul.f32 %v4330_v55, %v1375_v6  ;;  %v1374_v10 = vsub.f32 2.0, %v1372_v7 }
 0x75d   : > { %v1376_v11 = vmul.f32 %v4336_v4, %v1374_v10  ;;  %4078 = vmatmul.mubr.msk.f32.vlgmr.msra.gmra.mxu1 %vm678_vm3, %v1377_v8 }
 0x75e   : > { %4086 = vmatpush3.xpose.msk.msra.mxu1 %vm524_vm2, %v1534_v5  ;;  %4087 = vmatprep.mubr.msk.f32.mxu1 %vm4437_vm0, %v4436_v3 }
 0x75f   : > { %v1378_v13 = vmul.f32 %v4332_v58, %v1376_v11  ;;  %4095 = vmatprep.subr.mxu1 %v4436_v3 }
 0x761   : > { %4083 = vmatmul.mubr.msk.f32.vlgmr.msra.gmra.mxu0 %vm678_vm3, %v1378_v13  ;;  %4088 = vmatmul.mubr.msk.f32.vlgmr.msra.gmra.mxu1 %vm524_vm2, %v1532_v15 }
 0x762   : > { %4091 = vmatpush3.xpose.msk.msra.mxu0 %vm524_vm2, %v1612_v12  ;;  %4092 = vmatprep.mubr.msk.f32.mxu0 %vm4437_vm0, %v4436_v3 }
 0x763   : > { %4100 = vmatprep.subr.mxu0 %v4436_v3  ;;  %4097 = vmatprep.mubr.msk.f32.mxu1 %vm4437_vm0, %v4436_v3 }
 0x765   : > { %4093 = vmatmul.mubr.msk.f32.vlgmr.msra.gmra.mxu0 %vm524_vm2, %v1610_v16 }
 0x766   : > { %4102 = vmatprep.mubr.msk.f32.mxu0 %vm4437_vm0, %v4436_v3 }
 0x81d   : > { %v4702_v18 = vpop.f32.mrf.mxu1 }
 0x81f   : > { %v4079_v19 = vpop.f32.mrf.mxu1 }
 0x821   : > { %v4704_v21 = vpop.f32.mrf.mxu0  ;;  %v1605_v23 = vpop.f32.mrf.mxu1 }
 0x822   : > { %v4275_v24 = vpack.i.bf16 %v4704_v21, %v4702_v18  ;;  %v1687_v25 = vsel %vm678_vm3, %v1605_v23, -inf }
 0x823   : > { %1688 = vmax.xlane.f32.xlu0 %v1687_v25  ;;  %v4084_v26 = vpop.f32.mrf.mxu0  ;;  %v4089_v27 = vpop.f32.mrf.mxu1 }
 0x825   : > { %v1683_v28 = vpop.f32.mrf.mxu0 }
 0x826   : > { %v1690_v29 = vsel %vm678_vm3, %v1683_v28, -inf }
 0x827   : > { %1691 = vmax.xlane.f32.xlu1 %v1690_v29  ;;  %v4094_v30 = vpop.f32.mrf.mxu0 }
 0x838   : > { %1715 = vrot.lane.b32.xlu1 %v4584_v14, %s4448_s15 }
 0x83c   : > { %1869 = vrot.lane.b32.xlu1 %v4584_v14, %s4449_s18 }
 0x840   : > { %1947 = vrot.lane.b32.xlu1 %v4587_v17, %s4449_s18  ;;  %s4463_s18 = smov 16  }
 0x844   : > { %1945 = vrot.lane.b32.xlu1 %v4601_v22, %s4450_s19 }
 0x8ac   : > { %v1689_v31 = vpop.xlane.xlu0 %1688 }
 0x8ad   : > { %v1693_v32 = vsub.f32 %v1605_v23, %v1689_v31 }
 0x8af   : > { %v1695_v33 = vmul.f32 1.442695, %v1693_v32 }
 0x8b0   : > { %v1692_v34 = vpop.xlane.xlu1 %1691 }
 0x8b1   : > { %4337 = vpow2.f32 %v1695_v33  ;;  %v1694_v35 = vsub.f32 %v1683_v28, %v1692_v34 }
 0x8b3   : > { %v1697_v36 = vmul.f32 1.442695, %v1694_v35 }
 0x8b4   : > { %v1716_v38 = vpop.permute.xlu1 %1715 }
 0x8b5   : > { %4339 = vpow2.f32 %v1697_v36  ;;  %4096 = vmatpush3.msra.mxu1 %v1716_v38 }
 0x8b6   : > { %4105 = vmatprep.subr.mxu1 %v4436_v3 }
 0x8b8   : > { %v1870_v52 = vpop.permute.xlu1 %1869 }
 0x8bc   : > { %v1948_v60 = vpop.permute.xlu1 %1947 }
 0x8be   : > { %v4338_v40 = vpop.eup %4337 }
 0x8bf   : > { %v1699_v42 = vsel %vm678_vm3, %v4338_v40, 0.0 }
 0x8c0   : > { %1700 = vadd.xlane.f32.xlu0 %v1699_v42  ;;  %v1946_v63 = vpop.permute.xlu1 %1945 }
 0x8c2   : > { %v4340_v43 = vpop.eup %4339 }
 0x8c3   : > { %v1702_v44 = vsel %vm678_vm3, %v4340_v43, 0.0 }
 0x8c4   : > { %1703 = vadd.xlane.f32.xlu0 %v1702_v44 }
 0x8da   : > { %1791 = vrot.lane.b32.xlu0 %v4587_v17, %s4448_s15  ;;  %s4462_s15 = smov 8  }
 0x8de   : > { %1867 = vrot.lane.b32.xlu0 %v4592_v20, %s4450_s19  ;;  %s4464_s19 = smov 24  }
 0x949   : > { %v1701_v45 = vpop.xlane.xlu0 %1700 }
 0x94a   : > { %4341 = vrcp.f32 %v1701_v45 }
 0x94d   : > { %v1704_v46 = vpop.xlane.xlu0 %1703 }
 0x94e   : > { %4343 = vrcp.f32 %v1704_v46 }
 0x951   : > { %v1792_v47 = vpop.permute.xlu0 %1791 }
 0x952   : > { %4101 = vmatpush3.msra.mxu0 %v1792_v47 }
 0x953   : > { %4110 = vmatprep.subr.mxu0 %v4436_v3 }
 0x955   : > { %v1868_v62 = vpop.permute.xlu0 %1867 }
 0x957   : > { %v4342_v48 = vpop.eup %4341 }
 0x958   : > { %v1707_v49 = vmul.f32 %v4342_v48, %v1701_v45 }
 0x95a   : > { %v1709_v50 = vsub.f32 2.0, %v1707_v49 }
 0x95b   : > { %v4344_v51 = vpop.eup %4343 }
 0x95c   : > { %v1711_v53 = vmul.f32 %v4342_v48, %v1709_v50  ;;  %v1708_v54 = vmul.f32 %v4344_v51, %v1704_v46 }
 0x95e   : > { %v1713_v55 = vmul.f32 %v4338_v40, %v1711_v53  ;;  %v1710_v56 = vsub.f32 2.0, %v1708_v54 }
 0x960   : > { %v1712_v58 = vmul.f32 %v4344_v51, %v1710_v56  ;;  %4098 = vmatmul.mubr.msk.f32.vlgmr.msra.gmra.mxu1 %vm678_vm3, %v1713_v55 }
 0x961   : > { %4106 = vmatpush3.xpose.msk.msra.mxu1 %vm524_vm2, %v1870_v52  ;;  %4107 = vmatprep.mubr.msk.f32.mxu1 %vm4437_vm0, %v4436_v3 }
 0x962   : > { %v1714_v61 = vmul.f32 %v4340_v43, %v1712_v58  ;;  %4115 = vmatprep.subr.mxu1 %v4436_v3 }
 0x964   : > { %4103 = vmatmul.mubr.msk.f32.vlgmr.msra.gmra.mxu0 %vm678_vm3, %v1714_v61  ;;  %4108 = vmatmul.mubr.msk.f32.vlgmr.msra.gmra.mxu1 %vm524_vm2, %v1868_v62 }
 0x965   : > { %4111 = vmatpush3.xpose.msk.msra.mxu0 %vm524_vm2, %v1948_v60  ;;  %4112 = vmatprep.mubr.msk.f32.mxu0 %vm4437_vm0, %v4436_v3 }
 0x966   : > { %4120 = vmatprep.subr.mxu0 %v4436_v3  ;;  %4117 = vmatprep.mubr.msk.f32.mxu1 %vm4437_vm0, %v4436_v3 }
 0x968   : > { %4113 = vmatmul.mubr.msk.f32.vlgmr.msra.gmra.mxu0 %vm524_vm2, %v1946_v63 }
 0x969   : > { %4122 = vmatprep.mubr.msk.f32.mxu0 %vm4437_vm0, %v4436_v3 }
 0xa20   : > { %v4736_v0 = vpop.f32.mrf.mxu1 }
 0xa22   : > { %v4099_v1 = vpop.f32.mrf.mxu1 }
 0xa24   : > { %v4738_v2 = vpop.f32.mrf.mxu0  ;;  %v1941_v4 = vpop.f32.mrf.mxu1 }
 0xa25   : > { %v4280_v5 = vpack.i.bf16 %v4738_v2, %v4736_v0  ;;  %v2023_v6 = vsel %vm678_vm3, %v1941_v4, -inf }
 0xa26   : > { %2024 = vmax.xlane.f32.xlu0 %v2023_v6  ;;  %v4104_v7 = vpop.f32.mrf.mxu0  ;;  %v4109_v8 = vpop.f32.mrf.mxu1 }
 0xa28   : > { %v2019_v10 = vpop.f32.mrf.mxu0 }
 0xa29   : > { %v2026_v11 = vsel %vm678_vm3, %v2019_v10, -inf }
 0xa2a   : > { %2027 = vmax.xlane.f32.xlu1 %v2026_v11  ;;  %v4114_v12 = vpop.f32.mrf.mxu0 }
 0xa3b   : > { %2051 = vrot.lane.b32.xlu1 %v4584_v14, %s4451_s21 }
 0xa3f   : > { %2205 = vrot.lane.b32.xlu1 %v4584_v14, %s4452_s16 }
 0xa43   : > { %2283 = vrot.lane.b32.xlu1 %v4587_v17, %s4452_s16  ;;  %s4466_s16 = smov 20  }
 0xa47   : > { %2281 = vrot.lane.b32.xlu1 %v4601_v22, %s4453_s17 }
 0xaaf   : > { %v2025_v13 = vpop.xlane.xlu0 %2024 }
 0xab0   : > { %v2029_v15 = vsub.f32 %v1941_v4, %v2025_v13 }
 0xab2   : > { %v2031_v16 = vmul.f32 1.442695, %v2029_v15 }
 0xab3   : > { %v2028_v19 = vpop.xlane.xlu1 %2027 }
 0xab4   : > { %4345 = vpow2.f32 %v2031_v16  ;;  %v2030_v23 = vsub.f32 %v2019_v10, %v2028_v19 }
 0xab6   : > { %v2033_v25 = vmul.f32 1.442695, %v2030_v23 }
 0xab7   : > { %v2052_v26 = vpop.permute.xlu1 %2051 }
 0xab8   : > { %4347 = vpow2.f32 %v2033_v25  ;;  %4116 = vmatpush3.msra.mxu1 %v2052_v26 }
 0xab9   : > { %4125 = vmatprep.subr.mxu1 %v4436_v3 }
 0xabb   : > { %v2206_v40 = vpop.permute.xlu1 %2205 }
 0xabf   : > { %v2284_v47 = vpop.permute.xlu1 %2283 }
 0xac1   : > { %v4346_v27 = vpop.eup %4345 }
 0xac2   : > { %v2035_v28 = vsel %vm678_vm3, %v4346_v27, 0.0 }
 0xac3   : > { %2036 = vadd.xlane.f32.xlu0 %v2035_v28  ;;  %v2282_v50 = vpop.permute.xlu1 %2281 }
 0xac5   : > { %v4348_v29 = vpop.eup %4347 }
 0xac6   : > { %v2038_v30 = vsel %vm678_vm3, %v4348_v29, 0.0 }
 0xac7   : > { %2039 = vadd.xlane.f32.xlu0 %v2038_v30 }
 0xadd   : > { %2127 = vrot.lane.b32.xlu0 %v4587_v17, %s4451_s21  ;;  %s4465_s21 = smov 12  }
 0xae1   : > { %2203 = vrot.lane.b32.xlu0 %v4592_v20, %s4453_s17  ;;  %s4467_s17 = smov 28  }
 0xb4c   : > { %v2037_v31 = vpop.xlane.xlu0 %2036 }
 0xb4d   : > { %4349 = vrcp.f32 %v2037_v31 }
 0xb50   : > { %v2040_v32 = vpop.xlane.xlu0 %2039 }
 0xb51   : > { %4351 = vrcp.f32 %v2040_v32 }
 0xb54   : > { %v2128_v33 = vpop.permute.xlu0 %2127 }
 0xb55   : > { %4121 = vmatpush3.msra.mxu0 %v2128_v33 }
 0xb56   : > { %4130 = vmatprep.subr.mxu0 %v4436_v3 }
 0xb58   : > { %v2204_v49 = vpop.permute.xlu0 %2203 }
 0xb5a   : > { %v4350_v34 = vpop.eup %4349 }
 0xb5b   : > { %v2043_v35 = vmul.f32 %v4350_v34, %v2037_v31 }
 0xb5d   : > { %v2045_v36 = vsub.f32 2.0, %v2043_v35 }
 0xb5e   : > { %v4352_v38 = vpop.eup %4351 }
 0xb5f   : > { %v2047_v42 = vmul.f32 %v4350_v34, %v2045_v36  ;;  %v2044_v43 = vmul.f32 %v4352_v38, %v2040_v32 }
 0xb61   : > { %v2049_v44 = vmul.f32 %v4346_v27, %v2047_v42  ;;  %v2046_v45 = vsub.f32 2.0, %v2044_v43 }
 0xb63   : > { %v2048_v46 = vmul.f32 %v4352_v38, %v2046_v45  ;;  %4118 = vmatmul.mubr.msk.f32.vlgmr.msra.gmra.mxu1 %vm678_vm3, %v2049_v44 }
 0xb64   : > { %4126 = vmatpush3.xpose.msk.msra.mxu1 %vm524_vm2, %v2206_v40  ;;  %4127 = vmatprep.mubr.msk.f32.mxu1 %vm4437_vm0, %v4436_v3 }
 0xb65   : > { %v2050_v48 = vmul.f32 %v4348_v29, %v2048_v46  ;;  %4135 = vmatprep.subr.mxu1 %v4436_v3 }
 0xb67   : > { %4123 = vmatmul.mubr.msk.f32.vlgmr.msra.gmra.mxu0 %vm678_vm3, %v2050_v48  ;;  %4128 = vmatmul.mubr.msk.f32.vlgmr.msra.gmra.mxu1 %vm524_vm2, %v2204_v49 }
 0xb68   : > { %4131 = vmatpush3.xpose.msk.msra.mxu0 %vm524_vm2, %v2284_v47  ;;  %4132 = vmatprep.mubr.msk.f32.mxu0 %vm4437_vm0, %v4436_v3 }
 0xb69   : > { %4140 = vmatprep.subr.mxu0 %v4436_v3  ;;  %4137 = vmatprep.mubr.msk.f32.mxu1 %vm4437_vm0, %v4436_v3 }
 0xb6b   : > { %4133 = vmatmul.mubr.msk.f32.vlgmr.msra.gmra.mxu0 %vm524_vm2, %v2282_v50 }
 0xb6c   : > { %4142 = vmatprep.mubr.msk.f32.mxu0 %vm4437_vm0, %v4436_v3 }
 0xc23   : > { %v4770_v51 = vpop.f32.mrf.mxu1 }
 0xc25   : > { %v4119_v52 = vpop.f32.mrf.mxu1 }
 0xc27   : > { %v4772_v53 = vpop.f32.mrf.mxu0  ;;  %v2277_v54 = vpop.f32.mrf.mxu1 }
 0xc28   : > { %v4285_v55 = vpack.i.bf16 %v4772_v53, %v4770_v51  ;;  %v2359_v56 = vsel %vm678_vm3, %v2277_v54, -inf }
 0xc29   : > { %2360 = vmax.xlane.f32.xlu0 %v2359_v56  ;;  %v4124_v58 = vpop.f32.mrf.mxu0  ;;  %v4129_v60 = vpop.f32.mrf.mxu1 }
 0xc2b   : > { %v2355_v61 = vpop.f32.mrf.mxu0 }
 0xc2c   : > { %v2362_v62 = vsel %vm678_vm3, %v2355_v61, -inf }
 0xc2d   : > { %2363 = vmax.xlane.f32.xlu1 %v2362_v62  ;;  %v4134_v63 = vpop.f32.mrf.mxu0 }
 0xc3e   : > { %2387 = vrot.lane.b32.xlu1 %v4584_v14, %s4454_s20 }
 0xc42   : > { %2541 = vrot.lane.b32.xlu1 %v4584_v14, %s4455_s22 }
 0xc46   : > { %2619 = vrot.lane.b32.xlu1 %v4587_v17, %s4455_s22 }
 0xc4a   : > { %2617 = vrot.lane.b32.xlu1 %v4601_v22, %s4456_s24 }
 0xcb2   : > { %v2361_v1 = vpop.xlane.xlu0 %2360 }
 0xcb3   : > { %v2365_v4 = vsub.f32 %v2277_v54, %v2361_v1 }
 0xcb5   : > { %v2367_v6 = vmul.f32 1.442695, %v2365_v4 }
 0xcb6   : > { %v2364_v7 = vpop.xlane.xlu1 %2363 }
 0xcb7   : > { %4353 = vpow2.f32 %v2367_v6  ;;  %v2366_v8 = vsub.f32 %v2355_v61, %v2364_v7 }
 0xcb9   : > { %v2369_v10 = vmul.f32 1.442695, %v2366_v8 }
 0xcba   : > { %v2388_v11 = vpop.permute.xlu1 %2387 }
 0xcbb   : > { %4355 = vpow2.f32 %v2369_v10  ;;  %4136 = vmatpush3.msra.mxu1 %v2388_v11 }
 0xcbc   : > { %4145 = vmatprep.subr.mxu1 %v4436_v3 }
 0xcbe   : > { %v2542_v30 = vpop.permute.xlu1 %2541 }
 0xcc2   : > { %v2620_v36 = vpop.permute.xlu1 %2619 }
 0xcc4   : > { %v4354_v12 = vpop.eup %4353 }
 0xcc5   : > { %v2371_v13 = vsel %vm678_vm3, %v4354_v12, 0.0 }
 0xcc6   : > { %2372 = vadd.xlane.f32.xlu0 %v2371_v13  ;;  %v2618_v42 = vpop.permute.xlu1 %2617 }
 0xcc8   : > { %v4356_v15 = vpop.eup %4355 }
 0xcc9   : > { %v2374_v16 = vsel %vm678_vm3, %v4356_v15, 0.0 }
 0xcca   : > { %2375 = vadd.xlane.f32.xlu0 %v2374_v16 }
 0xce0   : > { %2463 = vrot.lane.b32.xlu0 %v4587_v17, %s4454_s20 }
 0xce4   : > { %2539 = vrot.lane.b32.xlu0 %v4592_v20, %s4456_s24 }
 0xd4f   : > { %v2373_v19 = vpop.xlane.xlu0 %2372 }
 0xd50   : > { %4357 = vrcp.f32 %v2373_v19 }
 0xd53   : > { %v2376_v23 = vpop.xlane.xlu0 %2375 }
 0xd54   : > { %4359 = vrcp.f32 %v2376_v23 }
 0xd57   : > { %v2464_v25 = vpop.permute.xlu0 %2463 }
 0xd58   : > { %4141 = vmatpush3.msra.mxu0 %v2464_v25 }
 0xd59   : > { %4150 = vmatprep.subr.mxu0 %v4436_v3 }
 0xd5b   : > { %v2540_v40 = vpop.permute.xlu0 %2539 }
 0xd5d   : > { %v4358_v26 = vpop.eup %4357 }
 0xd5e   : > { %v2379_v27 = vmul.f32 %v4358_v26, %v2373_v19 }
 0xd60   : > { %v2381_v28 = vsub.f32 2.0, %v2379_v27 }
 0xd61   : > { %v4360_v29 = vpop.eup %4359 }
 0xd62   : > { %v2383_v31 = vmul.f32 %v4358_v26, %v2381_v28  ;;  %v2380_v32 = vmul.f32 %v4360_v29, %v2376_v23 }
 0xd64   : > { %v2385_v33 = vmul.f32 %v4354_v12, %v2383_v31  ;;  %v2382_v34 = vsub.f32 2.0, %v2380_v32 }
 0xd66   : > { %v2384_v35 = vmul.f32 %v4360_v29, %v2382_v34  ;;  %4138 = vmatmul.mubr.msk.f32.vlgmr.msra.gmra.mxu1 %vm678_vm3, %v2385_v33 }
 0xd67   : > { %4146 = vmatpush3.xpose.msk.msra.mxu1 %vm524_vm2, %v2542_v30  ;;  %4147 = vmatprep.mubr.msk.f32.mxu1 %vm4437_vm0, %v4436_v3 }
 0xd68   : > { %v2386_v38 = vmul.f32 %v4356_v15, %v2384_v35  ;;  %4155 = vmatprep.subr.mxu1 %v4436_v3 }
 0xd6a   : > { %4143 = vmatmul.mubr.msk.f32.vlgmr.msra.gmra.mxu0 %vm678_vm3, %v2386_v38  ;;  %4148 = vmatmul.mubr.msk.f32.vlgmr.msra.gmra.mxu1 %vm524_vm2, %v2540_v40 }
 0xd6b   : > { %4151 = vmatpush3.xpose.msk.msra.mxu0 %vm524_vm2, %v2620_v36  ;;  %4152 = vmatprep.mubr.msk.f32.mxu0 %vm4437_vm0, %v4436_v3 }
 0xd6c   : > { %4160 = vmatprep.subr.mxu0 %v4436_v3  ;;  %4157 = vmatprep.mubr.msk.f32.mxu1 %vm4437_vm0, %v4436_v3 }
 0xd6e   : > { %4153 = vmatmul.mubr.msk.f32.vlgmr.msra.gmra.mxu0 %vm524_vm2, %v2618_v42 }
 0xd6f   : > { %4162 = vmatprep.mubr.msk.f32.mxu0 %vm4437_vm0, %v4436_v3 }
 0xe26   : > { %v4804_v43 = vpop.f32.mrf.mxu1 }
 0xe28   : > { %v4139_v44 = vpop.f32.mrf.mxu1 }
 0xe2a   : > { %v4806_v45 = vpop.f32.mrf.mxu0  ;;  %v2613_v46 = vpop.f32.mrf.mxu1 }
 0xe2b   : > { %v4290_v47 = vpack.i.bf16 %v4806_v45, %v4804_v43  ;;  %v2695_v48 = vsel %vm678_vm3, %v2613_v46, -inf }
 0xe2c   : > { %2696 = vmax.xlane.f32.xlu0 %v2695_v48  ;;  %v4144_v49 = vpop.f32.mrf.mxu0  ;;  %v4149_v50 = vpop.f32.mrf.mxu1 }
 0xe2e   : > { %v2691_v52 = vpop.f32.mrf.mxu0 }
 0xe2f   : > { %v2698_v54 = vsel %vm678_vm3, %v2691_v52, -inf }
 0xe30   : > { %2699 = vmax.xlane.f32.xlu1 %v2698_v54  ;;  %v4154_v56 = vpop.f32.mrf.mxu0 }
 0xe41   : > { %2723 = vrot.lane.b32.xlu1 %v4584_v14, %s4457_s25 }
 0xe45   : > { %2877 = vrot.lane.b32.xlu1 %v4584_v14, %s4458_s27 }
 0xe49   : > { %2955 = vrot.lane.b32.xlu1 %v4587_v17, %s4458_s27 }
 0xe4d   : > { %2953 = vrot.lane.b32.xlu1 %v4601_v22, %s4459_s28 }
 0xeb5   : > { %v2697_v58 = vpop.xlane.xlu0 %2696 }
 0xeb6   : > { %v2701_v60 = vsub.f32 %v2613_v46, %v2697_v58 }
 0xeb8   : > { %v2703_v61 = vmul.f32 1.442695, %v2701_v60 }
 0xeb9   : > { %v2700_v62 = vpop.xlane.xlu1 %2699 }
 0xeba   : > { %4361 = vpow2.f32 %v2703_v61  ;;  %v2702_v63 = vsub.f32 %v2691_v52, %v2700_v62 }
 0xebc   : > { %v2705_v1 = vmul.f32 1.442695, %v2702_v63  ;;  %v4308_v63 = vld [vmem:[%s4545_s23] sm:$0xff]  }
 0xebd   : > { %v2724_v4 = vpop.permute.xlu1 %2723 }
 0xebe   : > { %4363 = vpow2.f32 %v2705_v1  ;;  %4156 = vmatpush3.msra.mxu1 %v2724_v4 }
 0xebf   : > { %4165 = vmatprep.subr.mxu1 %v4436_v3 }
 0xec1   : > { %v2878_v23 = vpop.permute.xlu1 %2877 }
 0xec7   : > { %v4362_v6 = vpop.eup %4361 }
 0xec8   : > { %v2707_v7 = vsel %vm678_vm3, %v4362_v6, 0.0 }
 0xec9   : > { %2708 = vadd.xlane.f32.xlu0 %v2707_v7 }
 0xecb   : > { %v4364_v8 = vpop.eup %4363 }
 0xecc   : > { %v2710_v10 = vsel %vm678_vm3, %v4364_v8, 0.0 }
 0xecd   : > { %2711 = vadd.xlane.f32.xlu0 %v2710_v10 }
 0xee3   : > { %2799 = vrot.lane.b32.xlu0 %v4587_v17, %s4457_s25 }
 0xee7   : > { %2875 = vrot.lane.b32.xlu0 %v4592_v20, %s4459_s28  ;;  %v2956_v20 = vpop.permute.xlu1 %2955 }
 0xeeb   : > { %v2954_v32 = vpop.permute.xlu1 %2953 }
 0xf52   : > { %v2709_v22 = vpop.xlane.xlu0 %2708 }
 0xf53   : > { %4365 = vrcp.f32 %v2709_v22 }
 0xf56   : > { %v2712_v11 = vpop.xlane.xlu0 %2711 }
 0xf57   : > { %4367 = vrcp.f32 %v2712_v11 }
 0xf5a   : > { %v2800_v12 = vpop.permute.xlu0 %2799 }
 0xf5b   : > { %4161 = vmatpush3.msra.mxu0 %v2800_v12 }
 0xf5c   : > { %4170 = vmatprep.subr.mxu0 %v4436_v3 }
 0xf5e   : > { %v2876_v31 = vpop.permute.xlu0 %2875 }
 0xf60   : > { %v4366_v13 = vpop.eup %4365 }
 0xf61   : > { %v2715_v15 = vmul.f32 %v4366_v13, %v2709_v22 }
 0xf63   : > { %v2717_v16 = vsub.f32 2.0, %v2715_v15 }
 0xf64   : > { %v4368_v19 = vpop.eup %4367 }
 0xf65   : > { %v2719_v25 = vmul.f32 %v4366_v13, %v2717_v16  ;;  %v2716_v26 = vmul.f32 %v4368_v19, %v2712_v11 }
 0xf67   : > { %v2721_v27 = vmul.f32 %v4362_v6, %v2719_v25  ;;  %v2718_v28 = vsub.f32 2.0, %v2716_v26 }
 0xf69   : > { %v2720_v29 = vmul.f32 %v4368_v19, %v2718_v28  ;;  %4158 = vmatmul.mubr.msk.f32.vlgmr.msra.gmra.mxu1 %vm678_vm3, %v2721_v27 }
 0xf6a   : > { %4166 = vmatpush3.xpose.msk.msra.mxu1 %vm524_vm2, %v2878_v23  ;;  %4167 = vmatprep.mubr.msk.f32.mxu1 %vm4437_vm0, %v4436_v3 }
 0xf6b   : > { %v2722_v30 = vmul.f32 %v4364_v8, %v2720_v29  ;;  %4175 = vmatprep.subr.mxu1 %v4436_v3 }
 0xf6d   : > { %4163 = vmatmul.mubr.msk.f32.vlgmr.msra.gmra.mxu0 %vm678_vm3, %v2722_v30  ;;  %4168 = vmatmul.mubr.msk.f32.vlgmr.msra.gmra.mxu1 %vm524_vm2, %v2876_v31 }
 0xf6e   : > { %4171 = vmatpush3.xpose.msk.msra.mxu0 %vm524_vm2, %v2956_v20  ;;  %4172 = vmatprep.mubr.msk.f32.mxu0 %vm4437_vm0, %v4436_v3 }
 0xf6f   : > { %4180 = vmatprep.subr.mxu0 %v4436_v3  ;;  %4177 = vmatprep.mubr.msk.f32.mxu1 %vm4437_vm0, %v4436_v3 }
 0xf71   : > { %4173 = vmatmul.mubr.msk.f32.vlgmr.msra.gmra.mxu0 %vm524_vm2, %v2954_v32 }
 0xf72   : > { %4182 = vmatprep.mubr.msk.f32.mxu0 %vm4437_vm0, %v4436_v3 }
0x1029   : > { %v2795_v33 = vpop.f32.mrf.mxu1 }
0x102b   : > { %v4159_v34 = vpop.f32.mrf.mxu1 }
0x102d   : > { %v2871_v35 = vpop.f32.mrf.mxu0  ;;  %v2949_v36 = vpop.f32.mrf.mxu1 }
0x102e   : > { %v3031_v38 = vsel %vm678_vm3, %v2949_v36, -inf  ;;  %v4295_v49 = vpack.i.bf16 %v2871_v35, %v2795_v33 }
0x102f   : > { %3032 = vmax.xlane.f32.xlu0 %v3031_v38  ;;  %v4164_v40 = vpop.f32.mrf.mxu0  ;;  %v4169_v42 = vpop.f32.mrf.mxu1 }
0x1031   : > { %v3027_v44 = vpop.f32.mrf.mxu0 }
0x1032   : > { %v3034_v46 = vsel %vm678_vm3, %v3027_v44, -inf }
0x1033   : > { %3035 = vmax.xlane.f32.xlu1 %v3034_v46  ;;  %v4174_v48 = vpop.f32.mrf.mxu0 }
0x1044   : > { %3059 = vrot.lane.b32.xlu1 %v4584_v14, %s4460_s30 }
0x1048   : > { %4271 = vrot.lane.b32.xlu1 %v4270_v41, %s4461_s11 }
0x104c   : > { %4276 = vrot.lane.b32.xlu1 %v4275_v24, %s4462_s15 }
0x1050   : > { %4286 = vrot.lane.b32.xlu1 %v4285_v55, %s4463_s18 }
0x1054   : > { %4296 = vrot.lane.b32.xlu1 %v4295_v49, %s4464_s19 }
0x10b8   : > { %v3033_v50 = vpop.xlane.xlu0 %3032 }
0x10b9   : > { %v3037_v14 = vsub.f32 %v2949_v36, %v3033_v50 }
0x10bb   : > { %v3039_v52 = vmul.f32 1.442695, %v3037_v14 }
0x10bc   : > { %v3036_v54 = vpop.xlane.xlu1 %3035 }
0x10bd   : > { %4369 = vpow2.f32 %v3039_v52  ;;  %v3038_v37 = vsub.f32 %v3027_v44, %v3036_v54 }
0x10bf   : > { %v3041_v39 = vmul.f32 1.442695, %v3038_v37 }
0x10c0   : > { %v3060_v41 = vpop.permute.xlu1 %3059 }
0x10c1   : > { %4371 = vpow2.f32 %v3041_v39  ;;  %4176 = vmatpush3.msra.mxu1 %v3060_v41  ;;  %v3293_v39 = vsub.s32 1, %v4580_v9  ;;  %v4882_v41 = vld [vmem:[%s4560_s12] sm:$0xff] }
0x10c2   : > { %4185 = vmatprep.subr.bf16.mxu1 %v4436_v3 }
0x10c4   : > { %v4272_v10 = vpop.permute.xlu1 %4271 }
0x10c5   : > { %v4274_v12 = vunpack.i.h.bf16 %v4272_v10  ;;  %v4273_v13 = vunpack.i.l.bf16 %v4272_v10  ;;  %v4310_v10 = vld [vmem:[%s4550_s26] sm:$0xff]  }
0x10c7   : > { %v3268_v27 = vsel %vm524_vm2, %v4638_v59, %v4274_v12  ;;  %v3267_v28 = vsel %vm524_vm2, %v4636_v57, %v4273_v13 }
0x10c8   : > { %v4277_v22 = vpop.permute.xlu1 %4276 }
0x10c9   : > { %v4279_v15 = vunpack.i.h.bf16 %v4277_v22  ;;  %v4278_v16 = vunpack.i.l.bf16 %v4277_v22 }
0x10ca   : > { %v4370_v18 = vpop.eup %4369 }
0x10cb   : > { %v3043_v21 = vsel %vm678_vm3, %v4370_v18, 0.0  ;;  %v3269_v29 = vsel %vm678_vm3, %v3267_v28, %v4278_v16  ;;  %v3270_v20 = vsel %vm678_vm3, %v3268_v27, %v4279_v15  ;;  %v3388_v27 = vsub.s32 3, %v4580_v9 }
0x10cc   : > { %3044 = vadd.xlane.f32.xlu0 %v3043_v21  ;;  %v4287_v19 = vpop.permute.xlu1 %4286 }
0x10cd   : > { %v4289_v34 = vunpack.i.h.bf16 %v4287_v19  ;;  %v4288_v35 = vunpack.i.l.bf16 %v4287_v19  ;;  %v3382_v19 = vsub.s32 2, %v4580_v9 }
0x10ce   : > { %v4372_v24 = vpop.eup %4371 }
0x10cf   : > { %v3046_v51 = vsel %vm678_vm3, %v4372_v24, 0.0 }
0x10d0   : > { %3047 = vadd.xlane.f32.xlu0 %v3046_v51  ;;  %v4297_v36 = vpop.permute.xlu1 %4296 }
0x10d1   : > { %v4299_v57 = vunpack.i.h.bf16 %v4297_v36  ;;  %v4298_v44 = vunpack.i.l.bf16 %v4297_v36  ;;  %v4312_v36 = vld [vmem:[%s4555_s29] sm:$0xff]  }
0x10e6   : > { %3135 = vrot.lane.b32.xlu0 %v4587_v17, %s4460_s30 }
0x10ea   : > { %4281 = vrot.lane.b32.xlu0 %v4280_v5, %s4465_s21 }
0x10ee   : > { %4291 = vrot.lane.b32.xlu0 %v4290_v47, %s4466_s16  ;;  %v4307_v47 = vld [vmem:[%s4545_s23 + $0x8] sm:$0xff]  }
0x1155   : > { %v3045_v53 = vpop.xlane.xlu0 %3044 }
0x1156   : > { %4373 = vrcp.f32 %v3045_v53 }
0x1159   : > { %v3048_v55 = vpop.xlane.xlu0 %3047 }
0x115a   : > { %4375 = vrcp.f32 %v3048_v55 }
0x115d   : > { %v3136_v56 = vpop.permute.xlu0 %3135 }
0x115e   : > { %4181 = vmatpush3.msra.mxu0 %v3136_v56 }
0x115f   : > { %4193 = vmatprep.subr.bf16.mxu0 %v4436_v3 }
0x1161   : > { %v4282_v11 = vpop.permute.xlu0 %4281 }
0x1162   : > { %v4284_v23 = vunpack.i.h.bf16 %v4282_v11  ;;  %v4283_v25 = vunpack.i.l.bf16 %v4282_v11 }
0x1163   : > { %v4374_v17 = vpop.eup %4373 }
0x1164   : > { %v3051_v58 = vmul.f32 %v4374_v17, %v3045_v53  ;;  %v3272_v30 = vsel %vm3271_vm4, %v3269_v29, %v4283_v25  ;;  %v3273_v31 = vsel %vm3271_vm4, %v3270_v20, %v4284_v23  ;;  %v4394_v53 = vld [vmem:[#allocation2] sm:$0xff] }
0x1165   : > { %v4292_v26 = vpop.permute.xlu0 %4291  ;;  %v3275_v38 = vsel %vm3274_vm5, %v3272_v30, %v4288_v35  ;;  %v3276_v40 = vsel %vm3274_vm5, %v3273_v31, %v4289_v34  ;;  %v3389_v30 = vrot.slane %v4882_v41, %v3388_v27  ;;  %v4311_v35 = vld [vmem:[%s4555_s29 + $0x8] sm:$0xff]  }
0x1166   : > { %v3053_v60 = vsub.f32 2.0, %v3051_v58  ;;  %v4294_v32 = vunpack.i.h.bf16 %v4292_v26  ;;  %v4293_v33 = vunpack.i.l.bf16 %v4292_v26  ;;  %v3383_v26 = vrot.slane %v4882_v41, %v3382_v19 }
0x1167   : > { %v4376_v0 = vpop.eup %4375 }
0x1168   : > { %v3055_v2 = vmul.f32 %v4374_v17, %v3053_v60  ;;  %v3052_v5 = vmul.f32 %v4376_v0, %v3048_v55  ;;  %v3278_v42 = vsel %vm3277_vm6, %v3275_v38, %v4293_v33  ;;  %v3279_v59 = vsel %vm3277_vm6, %v3276_v40, %v4294_v32 }
0x1169   : > { %v3281_v50 = vsel %vm3280_vm7, %v3278_v42, %v4298_v44  ;;  %v3282_v14 = vsel %vm3280_vm7, %v3279_v59, %v4299_v57  ;;  %v3399_v38 = vsub.s32 4, %v4580_v9 }
0x116a   : > { %v3057_v61 = vmul.f32 %v4370_v18, %v3055_v2  ;;  %v3054_v62 = vsub.f32 2.0, %v3052_v5  ;;  %v3294_v18 = vrot.slane %v4882_v41, %v3293_v39 }
0x116b   : > { %v3400_v40 = vrot.slane %v4882_v41, %v3399_v38  ;;  %v3516_v38 = vsub.s32 5, %v4580_v9 }
0x116c   : > { %v3056_v43 = vmul.f32 %v4376_v0, %v3054_v62  ;;  %4178 = vmatmul.mubr.msk.f32.vlgmr.msra.gmra.mxu1 %vm678_vm3, %v3057_v61  ;;  %v4395_v0 = vld [vmem:[#allocation2 + $0x8] sm:$0xff] }
0x116d   : > { %4189 = vmatprep.mubr.msk.bf16.mxu1 %vm4437_vm0, %v4436_v3  ;;  %4186 = vmatpush3.bf16.msra.mxu1 %v4307_v47 }
0x116e   : > { %v3058_v45 = vmul.f32 %v4372_v24, %v3056_v43  ;;  %4187 = vmatprep.subr.bf16.mxu1 %v4436_v3 }
0x1170   : > { %4183 = vmatmul.mubr.msk.f32.vlgmr.msra.gmra.mxu0 %vm678_vm3, %v3058_v45 }
0x1171   : > { %4197 = vmatprep.mubr.msk.bf16.mxu0 %vm4437_vm0, %v4436_v3  ;;  %4188 = vmatpush3.bf16.msra.mxu1 %v4308_v63 }
0x1172   : > { %4201 = vmatprep.subr.bf16.mxu1 %v4436_v3 }
0x122c   : > { %v3131_v1 = vpop.f32.mrf.mxu1 }
0x122e   : > { %v4179_v4 = vpop.f32.mrf.mxu1 }
0x1230   : > { %v3207_v6 = vpop.f32.mrf.mxu0 }
0x1231   : > { %v4300_v7 = vpack.i.bf16 %v3207_v6, %v3131_v1 }
0x1232   : > { %v4184_v8 = vpop.f32.mrf.mxu0 }
0x1233   : > { %4301 = vrot.lane.b32.xlu0 %v4300_v7, %s4467_s17  ;;  %v4309_v8 = vld [vmem:[%s4550_s26 + $0x8] sm:$0xff]  }
0x1234   : > { %4194 = vmatpush3.bf16.msra.mxu0 %v4309_v8 }
0x1235   : > { %4195 = vmatprep.subr.bf16.mxu0 %v4436_v3 }
0x1238   : > { %4196 = vmatpush3.bf16.msra.mxu0 %v4310_v10 }
0x12a5   : > { %v4302_v46 = vpop.permute.xlu0 %4301 }
0x12a6   : > { %v4304_v48 = vunpack.i.h.bf16 %v4302_v46  ;;  %v4303_v49 = vunpack.i.l.bf16 %v4302_v46 }
0x12a8   : > { %v3285_v52 = vsel %vm3283_vm8, %v3282_v14, %v4304_v48  ;;  %v3284_v54 = vsel %vm3283_vm8, %v3281_v50, %v4303_v49 }
0x12a9   : > { %v3286_v37 = vpack.c.bf16 %v3285_v52, %v3284_v54 }
0x12ab   : > { %4190 = vmatmul.mubr.msk.bf16.vlgmr.msra.gmra.mxu1 %vm474_vm1, %v3286_v37 }
0x12ac   : > { %4205 = vmatprep.mubr.msk.bf16.mxu1 %vm4437_vm0, %v4436_v3  ;;  %4202 = vmatpush3.bf16.msra.mxu1 %v4311_v35 }
0x12ad   : > { %4203 = vmatprep.subr.bf16.mxu1 %v4436_v3 }
0x12b0   : > { %4204 = vmatpush3.bf16.msra.mxu1 %v4312_v36 }
0x136b   : > { %v3344_v21 = vpop.f32.mrf.mxu1 }
0x136c   : > { %v3345_v24 = vadd.f32 %v3344_v21, %v3294_v18 }
0x136d   : > { %v4191_v51 = vpop.f32.mrf.mxu1 }
0x136e   : > { %v3351_v55 = vadd.f32 %v4394_v53, %v3345_v24 }
0x136f   : > { %v3347_v56 = vpop.f32.mrf.mxu1 }
0x1370   : > { %v3348_v17 = vadd.f32 %v3347_v56, %v3294_v18  ;;  %v3353_v58 = vsel %vm474_vm1, %v3351_v55, 0.0 }
0x1371   : > { %3354 = vadd.xlane.f32.xlu1 %v3353_v58  ;;  %v4192_v60 = vpop.f32.mrf.mxu1 }
0x1372   : > { %v3352_v2 = vadd.f32 %v4395_v0, %v3348_v17 }
0x1374   : > { %v3356_v5 = vsel %vm474_vm1, %v3352_v2, 0.0 }
0x1375   : > { %3357 = vadd.xlane.f32.xlu0 %v3356_v5 }
0x13fa   : > { %v3355_v61 = vpop.xlane.xlu1 %3354 }
0x13fb   : > { %v3360_v62 = vmul.f32 0.03125, %v3355_v61 }
0x13fd   : > { %v3362_v43 = vsub.f32 %v3351_v55, %v3360_v62 }
0x13fe   : > { %v3358_v45 = vpop.xlane.xlu0 %3357 }
0x13ff   : > { %v3361_v47 = vmul.f32 0.03125, %v3358_v45  ;;  %v3364_v63 = vmul.f32 %v3362_v43, %v3362_v43 }
0x1401   : > { %v3363_v1 = vsub.f32 %v3352_v2, %v3361_v47  ;;  %v3366_v4 = vsel %vm474_vm1, %v3364_v63, 0.0 }
0x1402   : > { %3367 = vadd.xlane.f32.xlu0 %v3366_v4 }
0x1403   : > { %v3365_v6 = vmul.f32 %v3363_v1, %v3363_v1 }
0x1405   : > { %v3369_v7 = vsel %vm474_vm1, %v3365_v6, 0.0 }
0x1406   : > { %3370 = vadd.xlane.f32.xlu1 %v3369_v7 }
0x148b   : > { %v3368_v22 = vpop.xlane.xlu0 %3367 }
0x148c   : > { %v3372_v11 = vmul.f32 0.03125, %v3368_v22 }
0x148e   : > { %v3374_v12 = vadd.f32 1e-05, %v3372_v11 }
0x148f   : > { %v3371_v13 = vpop.xlane.xlu1 %3370 }
0x1490   : > { %4377 = vrsqrt.f32 %v3374_v12  ;;  %v3373_v15 = vmul.f32 0.03125, %v3371_v13 }
0x1492   : > { %v3375_v16 = vadd.f32 1e-05, %v3373_v15 }
0x1494   : > { %4379 = vrsqrt.f32 %v3375_v16  ;;  %v4468_v16 = vmov -1.0  }
0x149d   : > { %v4378_v23 = vpop.eup %4377 }
0x149e   : > { %v3378_v25 = vmul.f32 %v4378_v23, %v3362_v43 }
0x14a0   : > { %v3384_v20 = vmul.f32 %v3383_v26, %v3378_v25 }
0x14a1   : > { %v4380_v28 = vpop.eup %4379 }
0x14a2   : > { %v3379_v29 = vmul.f32 %v4380_v28, %v3363_v1  ;;  %v4896_v32 = vadd.f32 %v3389_v30, %v3384_v20 }
0x14a4   : > { %v3385_v31 = vmul.f32 %v3383_v26, %v3379_v29 }
0x14a6   : > { %v4898_v33 = vadd.f32 %v3389_v30, %v3385_v31 }
0x14a8   : > { %v3392_v34 = vpack.c.bf16 %v4898_v33, %v4896_v32 }
0x14aa   : > { %4198 = vmatmul.mubr.msk.bf16.vlgmr.msra.gmra.mxu0 %vm474_vm1, %v3392_v34 }
0x156a   : > { %v3450_v42 = vpop.f32.mrf.mxu0 }
0x156b   : > { %v3451_v59 = vadd.f32 %v3450_v42, %v3400_v40 }
0x156c   : > { %v4199_v57 = vpop.f32.mrf.mxu0 }
0x156d   : > { %v3459_v44 = vmul.f32 0.70710677, %v3451_v59  ;;  %v3457_v20 = vmul.f32 0.5, %v3451_v59 }
0x156e   : > { %v3453_v46 = vpop.f32.mrf.mxu0 }
0x156f   : > { %v3465_v48 = vand.u32 2147483647, %v3459_v44  ;;  %v3454_v49 = vadd.f32 %v3453_v46, %v3400_v40  ;;  %vm3461_vm9 = vcmp.ge.f32.partialorder %v3459_v44, 0.0  ;;  %v3517_v40 = vrot.slane %v4882_v41, %v3516_v38 }
0x1570   : > { %v4200_v50 = vpop.f32.mrf.mxu0  ;;  %v3463_v19 = vsel %vm3461_vm9, 1.0, %v4468_v16 }
0x1571   : > { %v3467_v14 = vmul.f32 0.3275911, %v3465_v48  ;;  %v3460_v52 = vmul.f32 0.70710677, %v3454_v49  ;;  %v3491_v18 = vsub.f32 0.0, %v3465_v48  ;;  %v3458_v30 = vmul.f32 0.5, %v3454_v49 }
0x1573   : > { %v3469_v54 = vadd.f32 1.0, %v3467_v14  ;;  %v3466_v37 = vand.u32 2147483647, %v3460_v52  ;;  %v3493_v21 = vmul.f32 %v3491_v18, %v3465_v48  ;;  %vm3462_vm10 = vcmp.ge.f32.partialorder %v3460_v52, 0.0 }
0x1574   : > { %v3464_v27 = vsel %vm3462_vm10, 1.0, %v4468_v16 }
0x1575   : > { %4381 = vrcp.f32 %v3469_v54  ;;  %v3468_v3 = vmul.f32 0.3275911, %v3466_v37  ;;  %v3492_v24 = vsub.f32 0.0, %v3466_v37  ;;  %v3495_v55 = vmul.f32 1.442695, %v3493_v21 }
0x1577   : > { %v3470_v39 = vadd.f32 1.0, %v3468_v3  ;;  %v3494_v56 = vmul.f32 %v3492_v24, %v3466_v37 }
0x1579   : > { %4383 = vrcp.f32 %v3470_v39  ;;  %v3497_v2 = vmul.f32 1.442695, %v3494_v56 }
0x157a   : > { %4385 = vpow2.f32 %v3495_v55 }
0x157b   : > { %4387 = vpow2.f32 %v3497_v2  ;;  %v3610_v2 = vsub.s32 7, %v4580_v9 }
0x1582   : > { %v4382_v51 = vpop.eup %4381 }
0x1583   : > { %v3473_v53 = vmul.f32 1.0614054, %v4382_v51 }
0x1585   : > { %v3475_v17 = vadd.f32 -1.4531521, %v3473_v53 }
0x1586   : > { %v4384_v58 = vpop.eup %4383 }
0x1587   : > { %v3477_v60 = vmul.f32 %v4382_v51, %v3475_v17  ;;  %v3474_v0 = vmul.f32 1.0614054, %v4384_v58  ;;  %v4386_v10 = vpop.eup %4385 }
0x1588   : > { %v4388_v15 = vpop.eup %4387 }
0x1589   : > { %v3479_v5 = vadd.f32 1.4214138, %v3477_v60  ;;  %v3476_v61 = vadd.f32 -1.4531521, %v3474_v0  ;;  %v3604_v0 = vsub.s32 6, %v4580_v9 }
0x158b   : > { %v3481_v62 = vmul.f32 %v4382_v51, %v3479_v5  ;;  %v3478_v43 = vmul.f32 %v4384_v58, %v3476_v61  ;;  %v3605_v5 = vrot.slane %v4882_v41, %v3604_v0 }
0x158d   : > { %v3483_v45 = vadd.f32 -0.28449672, %v3481_v62  ;;  %v3480_v47 = vadd.f32 1.4214138, %v3478_v43  ;;  %v3611_v62 = vrot.slane %v4882_v41, %v3610_v2 }
0x158f   : > { %v3485_v63 = vmul.f32 %v4382_v51, %v3483_v45  ;;  %v3482_v1 = vmul.f32 %v4384_v58, %v3480_v47 }
0x1591   : > { %v3487_v4 = vadd.f32 0.2548296, %v3485_v63  ;;  %v3484_v6 = vadd.f32 -0.28449672, %v3482_v1 }
0x1593   : > { %v3489_v7 = vmul.f32 %v4382_v51, %v3487_v4  ;;  %v3486_v8 = vmul.f32 %v4384_v58, %v3484_v6 }
0x1595   : > { %v3499_v22 = vmul.f32 %v4386_v10, %v3489_v7  ;;  %v3488_v11 = vadd.f32 0.2548296, %v3486_v8 }
0x1597   : > { %v3501_v12 = vsub.f32 1.0, %v3499_v22  ;;  %v3490_v13 = vmul.f32 %v4384_v58, %v3488_v11 }
0x1599   : > { %v3503_v23 = vmul.f32 %v3501_v12, %v3463_v19  ;;  %v3500_v25 = vmul.f32 %v4388_v15, %v3490_v13 }
0x159b   : > { %v3502_v26 = vsub.f32 1.0, %v3500_v25  ;;  %v3505_v28 = vadd.f32 1.0, %v3503_v23 }
0x159d   : > { %v3504_v29 = vmul.f32 %v3502_v26, %v3464_v27  ;;  %v3507_v34 = vmul.f32 %v3505_v28, %v3457_v20 }
0x159f   : > { %v3506_v31 = vadd.f32 1.0, %v3504_v29 }
0x15a1   : > { %v3508_v35 = vmul.f32 %v3506_v31, %v3458_v30 }
0x15a3   : > { %v3509_v36 = vpack.c.bf16 %v3508_v35, %v3507_v34 }
0x15a5   : > { %4206 = vmatmul.mubr.msk.bf16.vlgmr.msra.gmra.mxu1 %vm474_vm1, %v3509_v36 }
0x1665   : > { %v3567_v42 = vpop.f32.mrf.mxu1 }
0x1666   : > { %v3568_v57 = vadd.f32 %v3567_v42, %v3517_v40 }
0x1667   : > { %v4207_v44 = vpop.f32.mrf.mxu1 }
0x1668   : > { %v3574_v46 = vadd.f32 %v3568_v57, %v4896_v32 }
0x1669   : > { %v3570_v48 = vpop.f32.mrf.mxu1 }
0x166a   : > { %v3571_v50 = vadd.f32 %v3570_v48, %v3517_v40  ;;  %v3576_v59 = vsel %vm474_vm1, %v3574_v46, 0.0 }
0x166b   : > { %3577 = vadd.xlane.f32.xlu0 %v3576_v59  ;;  %v4208_v49 = vpop.f32.mrf.mxu1 }
0x166c   : > { %v3575_v14 = vadd.f32 %v3571_v50, %v4898_v33 }
0x166e   : > { %v3579_v52 = vsel %vm474_vm1, %v3575_v14, 0.0 }
0x166f   : > { %3580 = vadd.xlane.f32.xlu1 %v3579_v52 }
0x16f4   : > { %v3578_v54 = vpop.xlane.xlu0 %3577 }
0x16f5   : > { %v3582_v37 = vmul.f32 0.03125, %v3578_v54 }
0x16f7   : > { %v3584_v3 = vsub.f32 %v3574_v46, %v3582_v37 }
0x16f8   : > { %v3581_v39 = vpop.xlane.xlu1 %3580 }
0x16f9   : > { %v3583_v18 = vmul.f32 0.03125, %v3581_v39  ;;  %v3586_v21 = vmul.f32 %v3584_v3, %v3584_v3 }
0x16fb   : > { %v3585_v24 = vsub.f32 %v3575_v14, %v3583_v18  ;;  %v3588_v32 = vsel %vm474_vm1, %v3586_v21, 0.0 }
0x16fc   : > { %3589 = vadd.xlane.f32.xlu0 %v3588_v32 }
0x16fd   : > { %v3587_v51 = vmul.f32 %v3585_v24, %v3585_v24 }
0x16ff   : > { %v3591_v53 = vsel %vm474_vm1, %v3587_v51, 0.0 }
0x1700   : > { %3592 = vadd.xlane.f32.xlu1 %v3591_v53 }
0x1785   : > { %v3590_v55 = vpop.xlane.xlu0 %3589 }
0x1786   : > { %v3594_v56 = vmul.f32 0.03125, %v3590_v55 }
0x1788   : > { %v3596_v33 = vadd.f32 1e-05, %v3594_v56 }
0x1789   : > { %v3593_v17 = vpop.xlane.xlu1 %3592 }
0x178a   : > { %4389 = vrsqrt.f32 %v3596_v33  ;;  %v3595_v58 = vmul.f32 0.03125, %v3593_v17 }
0x178c   : > { %v3597_v60 = vadd.f32 1e-05, %v3595_v58 }
0x178e   : > { %4391 = vrsqrt.f32 %v3597_v60 }
0x1797   : > { %v4390_v61 = vpop.eup %4389 }
0x1798   : > { %v3600_v43 = vmul.f32 %v4390_v61, %v3584_v3 }
0x179a   : > { %v3606_v45 = vmul.f32 %v3605_v5, %v3600_v43 }
0x179b   : > { %v4392_v47 = vpop.eup %4391 }
0x179c   : > { %v3612_v63 = vadd.f32 %v3611_v62, %v3606_v45  ;;  %v3601_v1 = vmul.f32 %v4392_v47, %v3585_v24 }
0x179e   : > { %3614 = vst.msk [vmem:[#allocation2] sm:$0xff] %vm474_vm1, %v3612_v63  ;;  %v3607_v4 = vmul.f32 %v3605_v5, %v3601_v1  ;;  %3619 = sbr.rel (%p3922_p5) target bundleno = 6558 (0x199e), region = 98 }
0x17a0   : > { %v3613_v6 = vadd.f32 %v3611_v62, %v3607_v4 }
0x17a2   : > { %3615 = vst.msk [vmem:[#allocation2 + $0x8] sm:$0xff] %vm474_vm1, %v3613_v6 }
0x17a3   : > { %v3621_v9 = vrot.slane %v3613_v6, 7  ;;  %vm3623_vm11 = vcmask 1040384   ;;  %vm3627_vm12 = vcmask 254976   ;;  %v3658_v13 = vld [vmem:[%s4972_s8 + $0x18] sm:$0xff]  ;;  %v4469_v15 = vmov 0.0   ;;  %v3657_v16 = vld [vmem:[%s4972_s8 + $0x10] sm:$0xff] }
0x17a4   : > { %4209 = vmatprep.subr.mxu0 %v4469_v15  ;;  %vm4470_vm13 = vmmov 0   ;;  %v3656_v19 = vld [vmem:[%s4972_s8 + $0x8] sm:$0xff]  ;;  %v3655_v23 = vld [vmem:[%s4972_s8] sm:$0xff] }
0x17a5   : > { %v3624_v7 = vsel %vm3623_vm11, %v3612_v63, %v3621_v9  ;;  %4217 = vmatprep.mubr.msk.f32.mxu0 %vm4470_vm13, %v4469_v15  ;;  %4210 = vmatpush3.msra.mxu0 %v3658_v13  ;;  %v3923_v29 = vld [vmem:[%s4970_s6] ss:$0 sm:$0xff] }
0x17a6   : > { %v3628_v41 = vsel %vm3627_vm12, %v3624_v7, 0.0  ;;  %4211 = vmatprep.subr.mxu0 %v4469_v15  ;;  %v3924_v30 = vld [vmem:[%s4971_s7] ss:$0 sm:$0xff] }
0x17a7   : > { %3629 = vadd.xlane.f32.xlu0 %v3628_v41  ;;  %4212 = vmatpush3.msra.mxu0 %v3657_v16  ;;  %v3925_v35 = vld [vmem:[%s4973_s9] ss:$0 sm:$0xff] }
0x17a8   : > { %4213 = vmatprep.subr.mxu0 %v4469_v15 }
0x17a9   : > { %4214 = vmatpush3.msra.mxu0 %v3656_v19 }
0x17aa   : > { %4215 = vmatprep.subr.mxu0 %v4469_v15 }
0x17ab   : > { %4216 = vmatpush3.msra.mxu0 %v3655_v23 }
0x1830   : > { %v3630_v8 = vpop.xlane.xlu0 %3629 }
0x1831   : > { %v3631_v10 = vmul.f32 0.03125, %v3630_v8 }
0x1833   : > { %v3632_v22 = vsub.f32 %v3624_v7, %v3631_v10 }
0x1835   : > { %v3633_v11 = vmul.f32 %v3632_v22, %v3632_v22 }
0x1837   : > { %v3634_v12 = vsel %vm3627_vm12, %v3633_v11, 0.0 }
0x1838   : > { %3635 = vadd.xlane.f32.xlu0 %v3634_v12 }
0x18c1   : > { %v3636_v25 = vpop.xlane.xlu0 %3635 }
0x18c2   : > { %v3637_v26 = vmul.f32 0.03125, %v3636_v25 }
0x18c4   : > { %v3638_v27 = vadd.f32 1e-05, %v3637_v26 }
0x18c6   : > { %4396 = vrsqrt.f32 %v3638_v27 }
0x18d3   : > { %v4397_v28 = vpop.eup %4396 }
0x18d4   : > { %v3640_v20 = vmul.f32 %v4397_v28, %v3632_v22 }
0x18d6   : > { %v3647_v31 = vmul.f32 %v3923_v29, %v3640_v20 }
0x18d8   : > { %v3654_v34 = vadd.f32 %v3924_v30, %v3647_v31 }
0x18da   : > { %4218 = vmatmul.mubr.msk.f32.vlgmr.msra.gmra.mxu0 %vm474_vm1, %v3654_v34 }
0x199a   : > { %v3735_v36 = vpop.f32.mrf.mxu0 }
0x199b   : > { %v3736_v38 = vadd.f32 %v3925_v35, %v3735_v36 }
0x199c   : > { %v4219_v40 = vpop.f32.mrf.mxu0 }
0x199d   : > { %3739 = vst.msk [vmem:[#allocation4] sm:$0x3] %vm3627_vm12, %v3736_v38 }
0x199e PF: > { %p4224_p6 = scmp.eq.s32.totalorder %s4533_s14, 5  ;;  %s4471_s19 = smov [#allocation4]  }
0x199f   : > { %s3747_s21 = sshll.u32 %s4471_s19, 4  ;;  %s3748_s21 = int_to_ptr.vmem [resolvable:$true] %s3747_s21 }
0x19a0   : > { %s4398_s16 = scalar_lea.vmem %s3748_s21, 32  ;;  %p4405_p10 = scmp.lt.s32.totalorder %s3748_s21, %s3748_s21 }
0x19a1   : > { %p4399_p7 = scmp.ne.s32.totalorder %s3748_s21, %s4398_s16  ;;  %p4406_p11 = scmp.lt.s32.totalorder %s4398_s16, %s4398_s16 }
0x19a3   : > { %p4400_p8 = pnand %p4399_p7, %p4224_p6  ;;  %p4407_p12 = por %p4406_p11, %p4405_p10 }
0x19a5   : > { %p4401_p9 = pneg %p4400_p8 }
0x19a7   : > { %p4408_p13 = pnand %p4407_p12, %p4401_p9 }
0x19a9   : > { %4411 = shalt.err (!%p4408_p13)
}
0x19aa   : > { %4221 = dma.vmem_to_hbm [thread:$0]  (%p4224_p6), %s3748_s21, 32, %s4974_s10, [#allocation5]  }
0x19ab   : > { %4429 = dma.done.wait (%p4224_p6), [#allocation5], 32  }
0x19ac   : > { %4431 = vsyncadd (%p4224_p6), [#allocation5], 4294967264 }
0x19ad PF: > { %s21_s13 = sadd.s32 1, %s4434_s13  }
0x19ae   : > { %p18_p0 = scmp.ge.s32.totalorder %s21_s13, 8  }
0x19b0   :  { %20 = sbr.rel (!%p18_p0) target bundleno = 1 (0x1), region = 145 }
0x19b5   :  { %3760 = vsyncpa [#allocation5], 1 }
0x19b6   :  { %3762 = vsyncpa [#allocation5 + $0x1], 1 }
0x19b7   :  { %3763 = vsyncmov [#allocation3] }
0x19ba   :  { %s3764_s26 = vpop.sfrf %3763 }
0x19bb   :  { %p3931_p1 = scmp.ne.s32.totalorder %s3764_s26, 0 }
0x19bd   :  { %3768 = shalt.err (%p3931_p1)  }

</bundles_post_ra>
